<compile_context>
chip_gen: v5e
topology: v5e:2x2
jax: 0.10.0
libtpu: 0.0.40
codegen_flags: <defaults>
</compile_context>

<pallas_src>
import functools

import numpy as np
import jax
import jax.numpy as jnp
from jax.experimental import pallas as pl
from jax.experimental.pallas import tpu as pltpu

NEG_SLOPE = 0.2
HALO = 8                           # halo block rows (covers receptive fields <= 8)
VMEM_LIMIT = 48 * 1024 * 1024      # fits v7x's 64 MiB physical VMEM with headroom


def _cdiv(a, b):
    return -(-a // b)


def _round_up(a, b):
    return _cdiv(a, b) * b


def _pick_tile(L, tl):
    if tl is None:
        # generation-agnostic default; small layers collapse to a single tile.
        tl = max(HALO, min(512, _round_up(L, HALO)))
    assert tl % HALO == 0, "tile length must be a multiple of 8"
    return tl


def _leaky(v):
    return jnp.where(v > 0, v, NEG_SLOPE * v)


def _compiler_params():
    return pltpu.CompilerParams(
        dimension_semantics=("parallel", "parallel"),
        vmem_limit_bytes=VMEM_LIMIT)


def _halo_specs(tl, cin):
    """Main (1, TL, C) tile plus an 8-row right-halo view of the same array."""
    main = pl.BlockSpec((1, tl, cin), lambda b, j: (b, j, 0))
    halo = pl.BlockSpec((1, HALO, cin), lambda b, j: (b, (j + 1) * (tl // HALO), 0))
    return main, halo


def _pad_len(x, left_pad, tl):
    """Zero-pad (B, L, C) so every (TL + HALO)-row window is in bounds."""
    B, L, C = x.shape
    nt = _cdiv(L, tl)
    Lp = nt * tl + HALO
    right = Lp - left_pad - L
    assert right >= 0
    return jnp.pad(x, ((0, 0), (left_pad, right), (0, 0))), nt


# ----------------------------- kernels ------------------------------------ #

def _conv_kernel(x_ref, h_ref, w_ref, b_ref, o_ref, *, K, d, pre_act, post_tanh):
    """'same' Conv1d on one (TL, Cin) tile, optional fused LeakyReLU / tanh.

    x_ref (1,TL,Cin) main tile | h_ref (1,8,Cin) right halo
    w_ref (K*Cin,Cout) bf16    | b_ref (1,Cout) f32 | o_ref (1,TL,Cout) f32
    """
    TL = x_ref.shape[1]
    win = jnp.concatenate([x_ref[0], h_ref[0]], axis=0)            # (TL+8, Cin) f32
    if pre_act:
        win = _leaky(win)
    y = win.astype(jnp.bfloat16)
    # input-side im2col: one MXU matmul with K*Cin contraction depth
    cols = jnp.concatenate([y[k * d:k * d + TL, :] for k in range(K)], axis=-1)
    acc = jnp.dot(cols, w_ref[...], preferred_element_type=jnp.float32)
    acc = acc + b_ref[...]
    if post_tanh:
        acc = jnp.tanh(acc)
    o_ref[0] = acc


def _dilated_unit_kernel(x_ref, h_ref, w1_ref, b1_ref, w2_ref, b2_ref, o_ref, *, K, d):
    """Residual DilatedUnit, fully fused:
       out = x + Conv1x1( LReLU( Conv_{K,d}( LReLU(x) ) ) )."""
    TL = x_ref.shape[1]
    pad = (K - 1) * d // 2
    win = jnp.concatenate([x_ref[0], h_ref[0]], axis=0)            # (TL+8, dim) f32
    y = _leaky(win).astype(jnp.bfloat16)
    cols = jnp.concatenate([y[k * d:k * d + TL, :] for k in range(K)], axis=-1)
    h = jnp.dot(cols, w1_ref[...], preferred_element_type=jnp.float32) + b1_ref[...]
    z = _leaky(h).astype(jnp.bfloat16)
    z = jnp.dot(z, w2_ref[...], preferred_element_type=jnp.float32) + b2_ref[...]
    o_ref[0] = win[pad:pad + TL, :] + z                            # residual (original rows)


def _upsample_kernel(x_ref, h_ref, w_ref, b_ref, o_ref, *, r, cout):
    """LeakyReLU + ConvTranspose1d(2r, stride r, pad r//2), phase-packed output.

    Output tile row mm, lane block q' holds final time step (base+mm)*r+q' :
    the p = r//2 trim is folded in, so the wrapper reshape to (B, L*r, Cout)
    is a free row-major reshape.  No zero-concat overlap-add temporaries.
    """
    TL = x_ref.shape[1]
    p = r // 2
    win = jnp.concatenate([x_ref[0], h_ref[0]], axis=0)            # (TL+8, Cin) f32
    y = _leaky(win).astype(jnp.bfloat16)
    c = jnp.dot(y, w_ref[...], preferred_element_type=jnp.float32)  # (TL+8, 2r*Cout)
    slabs = []
    for qp in range(r):
        q = (qp + p) % r
        carry = (qp + p) // r
        slabs.append(c[carry + 1:carry + 1 + TL, q * cout:(q + 1) * cout]
                     + c[carry:carry + TL, (r + q) * cout:(r + q + 1) * cout])
    o_ref[0] = jnp.concatenate(slabs, axis=-1) + b_ref[...]


# ----------------------------- layer wrappers ------------------------------ #

def conv1d_block(x, weight, bias, *, dilation=1, pre_act=False, post_tanh=False, tl=None):
    """x: (B, L, Cin) f32; weight: (Cout, Cin, K) (PyTorch Conv1d); bias: (Cout,).
    Centered 'same' padding.  Returns (B, L, Cout) f32."""
    B, L, Cin = x.shape
    Cout, Cin_w, K = weight.shape
    assert Cin_w == Cin
    pad = (K - 1) * dilation // 2
    assert (K - 1) * dilation % 2 == 0 and 2 * pad <= HALO
    tl = _pick_tile(L, tl)
    xp, nt = _pad_len(x, pad, tl)
    w_mat = jnp.transpose(weight, (2, 1, 0)).reshape(K * Cin, Cout).astype(jnp.bfloat16)
    b2 = bias.reshape(1, Cout).astype(jnp.float32)
    main, halo = _halo_specs(tl, Cin)
    out = pl.pallas_call(
        functools.partial(_conv_kernel, K=K, d=dilation,
                          pre_act=pre_act, post_tanh=post_tanh),
        out_shape=jax.ShapeDtypeStruct((B, nt * tl, Cout), jnp.float32),
        grid=(B, nt),
        in_specs=[main, halo,
                  pl.BlockSpec((K * Cin, Cout), lambda b, j: (0, 0)),
                  pl.BlockSpec((1, Cout), lambda b, j: (0, 0))],
        out_specs=pl.BlockSpec((1, tl, Cout), lambda b, j: (b, j, 0)),
        compiler_params=_compiler_params(),
    )(xp, xp, w_mat, b2)
    return out if nt * tl == L else out[:, :L, :]


def dilated_unit_block(x, w1, b1, w2, b2, *, dilation, tl=None):
    """Residual(DilatedUnit(dim, K, dilation)).  x: (B, L, dim) f32.
    w1: (dim, dim, K), w2: (dim, dim, 1) (PyTorch Conv1d layouts)."""
    B, L, dim = x.shape
    K = w1.shape[2]
    pad = (K - 1) * dilation // 2
    assert (K - 1) * dilation % 2 == 0 and 2 * pad <= HALO
    tl = _pick_tile(L, tl)
    xp, nt = _pad_len(x, pad, tl)
    w1_mat = jnp.transpose(w1, (2, 1, 0)).reshape(K * dim, dim).astype(jnp.bfloat16)
    w2_mat = jnp.transpose(w2[:, :, 0], (1, 0)).astype(jnp.bfloat16)
    b1_2 = b1.reshape(1, dim).astype(jnp.float32)
    b2_2 = b2.reshape(1, dim).astype(jnp.float32)
    main, halo = _halo_specs(tl, dim)
    out = pl.pallas_call(
        functools.partial(_dilated_unit_kernel, K=K, d=dilation),
        out_shape=jax.ShapeDtypeStruct((B, nt * tl, dim), jnp.float32),
        grid=(B, nt),
        in_specs=[main, halo,
                  pl.BlockSpec((K * dim, dim), lambda b, j: (0, 0)),
                  pl.BlockSpec((1, dim), lambda b, j: (0, 0)),
                  pl.BlockSpec((dim, dim), lambda b, j: (0, 0)),
                  pl.BlockSpec((1, dim), lambda b, j: (0, 0))],
        out_specs=pl.BlockSpec((1, tl, dim), lambda b, j: (b, j, 0)),
        compiler_params=_compiler_params(),
    )(xp, xp, w1_mat, b1_2, w2_mat, b2_2)
    return out if nt * tl == L else out[:, :L, :]


def upsample_block(x, weight, bias, *, ratio, tl=None):
    """LeakyReLU(0.2) + ConvTranspose1d(Cin, Cout, 2*ratio, stride=ratio, pad=ratio//2).
    x: (B, L, Cin) f32; weight: (Cin, Cout, 2*ratio) (PyTorch ConvTranspose1d).
    Returns (B, L*ratio, Cout) f32."""
    B, L, Cin = x.shape
    Cin_w, Cout, K = weight.shape
    assert Cin_w == Cin and K == 2 * ratio
    # TODO(synk): odd ratios give Lout = L*r + 1; only even ratios (as RAVE uses) handled.
    assert ratio % 2 == 0
    tl = _pick_tile(L, tl)
    xp, nt = _pad_len(x, 1, tl)                  # 1-row left halo for the k >= r taps
    w_mat = jnp.transpose(weight, (0, 2, 1)).reshape(Cin, K * Cout).astype(jnp.bfloat16)
    b_t = jnp.tile(bias, (ratio,)).reshape(1, ratio * Cout).astype(jnp.float32)
    main, halo = _halo_specs(tl, Cin)
    out = pl.pallas_call(
        functools.partial(_upsample_kernel, r=ratio, cout=Cout),
        out_shape=jax.ShapeDtypeStruct((B, nt * tl, ratio * Cout), jnp.float32),
        grid=(B, nt),
        in_specs=[main, halo,
                  pl.BlockSpec((Cin, K * Cout), lambda b, j: (0, 0)),
                  pl.BlockSpec((1, ratio * Cout), lambda b, j: (0, 0))],
        out_specs=pl.BlockSpec((1, tl, ratio * Cout), lambda b, j: (b, j, 0)),
        compiler_params=_compiler_params(),
    )(xp, xp, w_mat, b_t)
    out = out.reshape(B, nt * tl * ratio, Cout)   # free row-major reshape
    Lout = L * ratio
    return out if nt * tl == L else out[:, :Lout, :]


# ----------------------------- full forward -------------------------------- #

def generator_v2_forward(x_ncl, params, *, ratios, dilations, tl=None):
    """GeneratorV2.forward (identity norm, no recurrent/adain/noise/amp-mod, cond=None).

    x_ncl: (B, latent_size, L) f32 (PyTorch NCL layout).
    `ratios` / `dilations` are the *already reversed* per-stage static lists,
    matching params['stages'].  Returns (B, data_size, L * prod(ratios)) f32.
    """
    x = jnp.transpose(x_ncl, (0, 2, 1))                       # NCL -> NLC (once)
    x = conv1d_block(x, params['conv_in']['w'], params['conv_in']['b'],
                     dilation=1, pre_act=False, tl=tl)
    for stage, r, dils in zip(params['stages'], ratios, dilations):
        x = upsample_block(x, stage['up_w'], stage['up_b'], ratio=r, tl=tl)
        for unit, d in zip(stage['units'], dils):
            x = dilated_unit_block(x, unit['w1'], unit['b1'],
                                   unit['w2'], unit['b2'], dilation=d, tl=tl)
    x = conv1d_block(x, params['wave']['w'], params['wave']['b'],
                     dilation=1, pre_act=True, post_tanh=True, tl=tl)
    return jnp.transpose(x, (0, 2, 1))                        # NLC -> NCL (once)


# ----------------------------- numpy reference ----------------------------- #

def _np_leaky(v):
    return np.where(v > 0, v, NEG_SLOPE * v).astype(np.float32)


def _np_conv1d(x, w, b, d=1):
    B, Ci, L = x.shape
    Co, _, K = w.shape
    pad = (K - 1) * d // 2
    xp = np.pad(x, ((0, 0), (0, 0), (pad, pad)))
    out = np.zeros((B, Co, L), np.float32)
    for k in range(K):
        out += np.einsum('bcl,oc->bol', xp[:, :, k * d:k * d + L], w[:, :, k])
    return out + b[None, :, None]


def _np_convtranspose1d(x, w, b, r):
    B, Ci, L = x.shape
    _, Co, K = w.shape
    p = r // 2
    Lout = (L - 1) * r - 2 * p + K
    out = np.zeros((B, Co, Lout), np.float32)
    for i in range(L):
        for k in range(K):
            t = i * r + k - p
            if 0 <= t < Lout:
                out[:, :, t] += np.einsum('bc,cd->bd', x[:, :, i], w[:, :, k])
    return out + b[None, :, None]


def _np_generator_v2(x, params, *, ratios, dilations):
    y = _np_conv1d(x, params['conv_in']['w'], params['conv_in']['b'], 1)
    for stage, r, dils in zip(params['stages'], ratios, dilations):
        y = _np_convtranspose1d(_np_leaky(y), stage['up_w'], stage['up_b'], r)
        for unit, d in zip(stage['units'], dils):
            h = _np_conv1d(_np_leaky(y), unit['w1'], unit['b1'], d)
            h = _np_conv1d(_np_leaky(h), unit['w2'], unit['b2'], 1)
            y = y + h
    y = _np_conv1d(_np_leaky(y), params['wave']['w'], params['wave']['b'], 1)
    return np.tanh(y)


# ----------------------------- demo ---------------------------------------- #

if __name__ == "__main__":
    key = jax.random.PRNGKey(0)

    # Small GeneratorV2: capacity=8, ratios=[2,2], latent_size=16, kernel_size=3,
    # dilations=[1,3], keep_dim=False, data_size=1, n_channels=1.
    capacity, latent_size, kernel_size = 8, 16, 3
    ratios, dilations, data_size = [2, 2], [1, 3], 1
    B, L = 2, 16
    TL = 8          # small tile so the length-tiling + halo path is exercised

    ratios_rev = ratios[::-1]
    dil_rev = [list(dilations) for _ in ratios][::-1]
    num_channels = (2 ** len(ratios)) * capacity            # 32

    keys = iter(jax.random.split(key, 64))

    def rnd(shape, scale=0.1):
        return scale * jax.random.normal(next(keys), shape, dtype=jnp.float32)

    params = {'conv_in': dict(w=rnd((num_channels, latent_size, kernel_size)),
                              b=rnd((num_channels,))),
              'stages': []}
    ch = num_channels
    for r, dils in zip(ratios_rev, dil_rev):
        out_ch = ch // 2
        stage = dict(up_w=rnd((ch, out_ch, 2 * r)), up_b=rnd((out_ch,)), units=[])
        ch = out_ch
        for d in dils:
            stage['units'].append(dict(w1=rnd((ch, ch, kernel_size)), b1=rnd((ch,)),
                                       w2=rnd((ch, ch, 1)), b2=rnd((ch,))))
        params['stages'].append(stage)
    params['wave'] = dict(w=rnd((data_size, ch, 2 * kernel_size + 1)),
                          b=rnd((data_size,)))

    x = jax.random.normal(next(keys), (B, latent_size, L), dtype=jnp.float32)

    fwd = jax.jit(functools.partial(
        generator_v2_forward,
        ratios=tuple(ratios_rev),
        dilations=tuple(tuple(d) for d in dil_rev),
        tl=TL))
    out = jax.block_until_ready(fwd(x, params))
    assert out.shape == (B, data_size, L * int(np.prod(ratios))), out.shape

    np_params = jax.tree_util.tree_map(np.asarray, params)
    ref = _np_generator_v2(np.asarray(x), np_params,
                           ratios=ratios_rev, dilations=dil_rev)
    np.testing.assert_allclose(np.asarray(out), ref, atol=5e-2, rtol=5e-2)

    print("KERNEL_OK")
</pallas_src>

<mosaic_0001>
module attributes {stable_mosaic.version = 11 : i64} {
  func.func @_conv_kernel(%arg0: i32, %arg1: i32, %arg2: memref<1x8x16xf32, #tpu.memory_space<vmem>>, %arg3: memref<1x8x16xf32, #tpu.memory_space<vmem>>, %arg4: memref<48x32xbf16, #tpu.memory_space<vmem>>, %arg5: memref<1x32xf32, #tpu.memory_space<vmem>>, %arg6: memref<1x8x32xf32, #tpu.memory_space<vmem>>) attributes {dimension_semantics = [#tpu.dimension_semantics<parallel>, #tpu.dimension_semantics<parallel>], iteration_bounds = array<i64: 2, 2>, scalar_prefetch = 0 : i64, scratch_operands = 0 : i64, tpu.core_type = #tpu.core_type<tc>, window_params = [{transform_indices = @transform_0, window_bounds = array<i64: 1, 8, 16>}, {transform_indices = @transform_1, window_bounds = array<i64: 1, 8, 16>}, {pipeline_mode = #tpu.pipeline_mode<synchronous>, transform_indices = @transform_2, window_bounds = array<i64: 48, 32>}, {pipeline_mode = #tpu.pipeline_mode<synchronous>, transform_indices = @transform_3, window_bounds = array<i64: 1, 32>}, {transform_indices = @transform_4, window_bounds = array<i64: 1, 8, 32>}]} {
    %c0 = arith.constant 0 : index
    %c0_0 = arith.constant 0 : index
    %c0_1 = arith.constant 0 : index
    %0 = vector.load %arg2[%c0, %c0_0, %c0_1] : memref<1x8x16xf32, #tpu.memory_space<vmem>>, vector<1x8x16xf32>
    %1 = vector.shape_cast %0 : vector<1x8x16xf32> to vector<8x16xf32>
    %c0_2 = arith.constant 0 : index
    %c0_3 = arith.constant 0 : index
    %c0_4 = arith.constant 0 : index
    %2 = vector.load %arg3[%c0_2, %c0_3, %c0_4] : memref<1x8x16xf32, #tpu.memory_space<vmem>>, vector<1x8x16xf32>
    %3 = vector.shape_cast %2 : vector<1x8x16xf32> to vector<8x16xf32>
    %4 = tpu.concatenate %1, %3 in 0 : vector<8x16xf32>, vector<8x16xf32> -> vector<16x16xf32>
    %5 = arith.truncf %4 : vector<16x16xf32> to vector<16x16xbf16>
    %6 = vector.extract_strided_slice %5 {offsets = [0, 0], sizes = [8, 16], strides = [1, 1]} : vector<16x16xbf16> to vector<8x16xbf16>
    %7 = vector.extract_strided_slice %5 {offsets = [1, 0], sizes = [8, 16], strides = [1, 1]} : vector<16x16xbf16> to vector<8x16xbf16>
    %8 = vector.extract_strided_slice %5 {offsets = [2, 0], sizes = [8, 16], strides = [1, 1]} : vector<16x16xbf16> to vector<8x16xbf16>
    %9 = tpu.concatenate %6, %7, %8 in 1 : vector<8x16xbf16>, vector<8x16xbf16>, vector<8x16xbf16> -> vector<8x48xbf16>
    %c0_5 = arith.constant 0 : index
    %c0_6 = arith.constant 0 : index
    %10 = vector.load %arg4[%c0_5, %c0_6] : memref<48x32xbf16, #tpu.memory_space<vmem>>, vector<48x32xbf16>
    %cst = arith.constant dense<0.000000e+00> : vector<8x32xf32>
    %11 = tpu.matmul %9, %10, %cst {dimension_numbers = #tpu.dot_dimension_numbers<[1], [0], [0], [1], [0, 0, 1, 1], [], []>} : vector<8x48xbf16>, vector<48x32xbf16>, vector<8x32xf32> -> vector<8x32xf32>
    %c0_7 = arith.constant 0 : index
    %c0_8 = arith.constant 0 : index
    %12 = vector.load %arg5[%c0_7, %c0_8] : memref<1x32xf32, #tpu.memory_space<vmem>>, vector<1x32xf32>
    %13 = vector.broadcast %12 : vector<1x32xf32> to vector<8x32xf32>
    %14 = arith.addf %11, %13 : vector<8x32xf32>
    %c0_9 = arith.constant 0 : index
    %c0_10 = arith.constant 0 : index
    %c0_11 = arith.constant 0 : index
    %15 = vector.load %arg6[%c0_9, %c0_10, %c0_11] : memref<1x8x32xf32, #tpu.memory_space<vmem>>, vector<1x8x32xf32>
    %16 = vector.shape_cast %15 : vector<1x8x32xf32> to vector<8x32xf32>
    %17 = vector.shape_cast %14 : vector<8x32xf32> to vector<1x8x32xf32>
    tpu.vector_store %arg6[%c0_9, %c0_10, %c0_11], %17 {strides = array<i32>} : memref<1x8x32xf32, #tpu.memory_space<vmem>>, vector<1x8x32xf32>,
    return
  }
  func.func @transform_0(%arg0: i32, %arg1: i32) -> (i32, i32, i32) {
    %c0_i32 = arith.constant 0 : i32
    %c0_i32_0 = arith.constant 0 : i32
    return %arg0, %arg1, %c0_i32 : i32, i32, i32
  }
  func.func @transform_1(%arg0: i32, %arg1: i32) -> (i32, i32, i32) {
    %c1_i32 = arith.constant 1 : i32
    %0 = arith.addi %arg1, %c1_i32 : i32
    %c1_i32_0 = arith.constant 1 : i32
    %1 = arith.muli %0, %c1_i32_0 : i32
    %c0_i32 = arith.constant 0 : i32
    %c0_i32_1 = arith.constant 0 : i32
    return %arg0, %1, %c0_i32 : i32, i32, i32
  }
  func.func @transform_2(%arg0: i32, %arg1: i32) -> (i32, i32) {
    %c0_i32 = arith.constant 0 : i32
    %c0_i32_0 = arith.constant 0 : i32
    %c0_i32_1 = arith.constant 0 : i32
    return %c0_i32, %c0_i32_0 : i32, i32
  }
  func.func @transform_3(%arg0: i32, %arg1: i32) -> (i32, i32) {
    %c0_i32 = arith.constant 0 : i32
    %c0_i32_0 = arith.constant 0 : i32
    %c0_i32_1 = arith.constant 0 : i32
    return %c0_i32, %c0_i32_0 : i32, i32
  }
  func.func @transform_4(%arg0: i32, %arg1: i32) -> (i32, i32, i32) {
    %c0_i32 = arith.constant 0 : i32
    %c0_i32_0 = arith.constant 0 : i32
    return %arg0, %arg1, %c0_i32 : i32, i32, i32
  }
}

module attributes {stable_mosaic.version = 11 : i64} {
  func.func @_upsample_kernel(%arg0: i32, %arg1: i32, %arg2: memref<1x8x32xf32, #tpu.memory_space<vmem>>, %arg3: memref<1x8x32xf32, #tpu.memory_space<vmem>>, %arg4: memref<32x64xbf16, #tpu.memory_space<vmem>>, %arg5: memref<1x32xf32, #tpu.memory_space<vmem>>, %arg6: memref<1x8x32xf32, #tpu.memory_space<vmem>>) attributes {dimension_semantics = [#tpu.dimension_semantics<parallel>, #tpu.dimension_semantics<parallel>], iteration_bounds = array<i64: 2, 2>, scalar_prefetch = 0 : i64, scratch_operands = 0 : i64, tpu.core_type = #tpu.core_type<tc>, window_params = [{transform_indices = @transform_0, window_bounds = array<i64: 1, 8, 32>}, {transform_indices = @transform_1, window_bounds = array<i64: 1, 8, 32>}, {pipeline_mode = #tpu.pipeline_mode<synchronous>, transform_indices = @transform_2, window_bounds = array<i64: 32, 64>}, {pipeline_mode = #tpu.pipeline_mode<synchronous>, transform_indices = @transform_3, window_bounds = array<i64: 1, 32>}, {transform_indices = @transform_4, window_bounds = array<i64: 1, 8, 32>}]} {
    %c0 = arith.constant 0 : index
    %c0_0 = arith.constant 0 : index
    %c0_1 = arith.constant 0 : index
    %0 = vector.load %arg2[%c0, %c0_0, %c0_1] : memref<1x8x32xf32, #tpu.memory_space<vmem>>, vector<1x8x32xf32>
    %1 = vector.shape_cast %0 : vector<1x8x32xf32> to vector<8x32xf32>
    %c0_2 = arith.constant 0 : index
    %c0_3 = arith.constant 0 : index
    %c0_4 = arith.constant 0 : index
    %2 = vector.load %arg3[%c0_2, %c0_3, %c0_4] : memref<1x8x32xf32, #tpu.memory_space<vmem>>, vector<1x8x32xf32>
    %3 = vector.shape_cast %2 : vector<1x8x32xf32> to vector<8x32xf32>
    %4 = tpu.concatenate %1, %3 in 0 : vector<8x32xf32>, vector<8x32xf32> -> vector<16x32xf32>
    %cst = arith.constant 0.000000e+00 : f32
    %5 = vector.broadcast %cst : f32 to vector<16x32xf32>
    %6 = arith.cmpf ogt, %4, %5 : vector<16x32xf32>
    %cst_5 = arith.constant 2.000000e-01 : f32
    %7 = vector.broadcast %cst_5 : f32 to vector<16x32xf32>
    %8 = arith.mulf %7, %4 : vector<16x32xf32>
    %9 = arith.select %6, %4, %8 : vector<16x32xi1>, vector<16x32xf32>
    %10 = arith.truncf %9 : vector<16x32xf32> to vector<16x32xbf16>
    %c0_6 = arith.constant 0 : index
    %c0_7 = arith.constant 0 : index
    %11 = vector.load %arg4[%c0_6, %c0_7] : memref<32x64xbf16, #tpu.memory_space<vmem>>, vector<32x64xbf16>
    %cst_8 = arith.constant dense<0.000000e+00> : vector<16x64xf32>
    %12 = tpu.matmul %10, %11, %cst_8 {dimension_numbers = #tpu.dot_dimension_numbers<[1], [0], [0], [1], [0, 0, 1, 1], [], []>} : vector<16x32xbf16>, vector<32x64xbf16>, vector<16x64xf32> -> vector<16x64xf32>
    %13 = vector.extract_strided_slice %12 {offsets = [1, 16], sizes = [8, 16], strides = [1, 1]} : vector<16x64xf32> to vector<8x16xf32>
    %14 = vector.extract_strided_slice %12 {offsets = [0, 48], sizes = [8, 16], strides = [1, 1]} : vector<16x64xf32> to vector<8x16xf32>
    %15 = arith.addf %13, %14 : vector<8x16xf32>
    %16 = vector.extract_strided_slice %12 {offsets = [2, 0], sizes = [8, 16], strides = [1, 1]} : vector<16x64xf32> to vector<8x16xf32>
    %17 = vector.extract_strided_slice %12 {offsets = [1, 32], sizes = [8, 16], strides = [1, 1]} : vector<16x64xf32> to vector<8x16xf32>
    %18 = arith.addf %16, %17 : vector<8x16xf32>
    %19 = tpu.concatenate %15, %18 in 1 : vector<8x16xf32>, vector<8x16xf32> -> vector<8x32xf32>
    %c0_9 = arith.constant 0 : index
    %c0_10 = arith.constant 0 : index
    %20 = vector.load %arg5[%c0_9, %c0_10] : memref<1x32xf32, #tpu.memory_space<vmem>>, vector<1x32xf32>
    %21 = vector.broadcast %20 : vector<1x32xf32> to vector<8x32xf32>
    %22 = arith.addf %19, %21 : vector<8x32xf32>
    %c0_11 = arith.constant 0 : index
    %c0_12 = arith.constant 0 : index
    %c0_13 = arith.constant 0 : index
    %23 = vector.load %arg6[%c0_11, %c0_12, %c0_13] : memref<1x8x32xf32, #tpu.memory_space<vmem>>, vector<1x8x32xf32>
    %24 = vector.shape_cast %23 : vector<1x8x32xf32> to vector<8x32xf32>
    %25 = vector.shape_cast %22 : vector<8x32xf32> to vector<1x8x32xf32>
    tpu.vector_store %arg6[%c0_11, %c0_12, %c0_13], %25 {strides = array<i32>} : memref<1x8x32xf32, #tpu.memory_space<vmem>>, vector<1x8x32xf32>,
    return
  }
  func.func @transform_0(%arg0: i32, %arg1: i32) -> (i32, i32, i32) {
    %c0_i32 = arith.constant 0 : i32
    %c0_i32_0 = arith.constant 0 : i32
    return %arg0, %arg1, %c0_i32 : i32, i32, i32
  }
  func.func @transform_1(%arg0: i32, %arg1: i32) -> (i32, i32, i32) {
    %c1_i32 = arith.constant 1 : i32
    %0 = arith.addi %arg1, %c1_i32 : i32
    %c1_i32_0 = arith.constant 1 : i32
    %1 = arith.muli %0, %c1_i32_0 : i32
    %c0_i32 = arith.constant 0 : i32
    %c0_i32_1 = arith.constant 0 : i32
    return %arg0, %1, %c0_i32 : i32, i32, i32
  }
  func.func @transform_2(%arg0: i32, %arg1: i32) -> (i32, i32) {
    %c0_i32 = arith.constant 0 : i32
    %c0_i32_0 = arith.constant 0 : i32
    %c0_i32_1 = arith.constant 0 : i32
    return %c0_i32, %c0_i32_0 : i32, i32
  }
  func.func @transform_3(%arg0: i32, %arg1: i32) -> (i32, i32) {
    %c0_i32 = arith.constant 0 : i32
    %c0_i32_0 = arith.constant 0 : i32
    %c0_i32_1 = arith.constant 0 : i32
    return %c0_i32, %c0_i32_0 : i32, i32
  }
  func.func @transform_4(%arg0: i32, %arg1: i32) -> (i32, i32, i32) {
    %c0_i32 = arith.constant 0 : i32
    %c0_i32_0 = arith.constant 0 : i32
    return %arg0, %arg1, %c0_i32 : i32, i32, i32
  }
}

module attributes {stable_mosaic.version = 11 : i64} {
  func.func @_dilated_unit_kernel(%arg0: i32, %arg1: i32, %arg2: memref<1x8x16xf32, #tpu.memory_space<vmem>>, %arg3: memref<1x8x16xf32, #tpu.memory_space<vmem>>, %arg4: memref<48x16xbf16, #tpu.memory_space<vmem>>, %arg5: memref<1x16xf32, #tpu.memory_space<vmem>>, %arg6: memref<16x16xbf16, #tpu.memory_space<vmem>>, %arg7: memref<1x16xf32, #tpu.memory_space<vmem>>, %arg8: memref<1x8x16xf32, #tpu.memory_space<vmem>>) attributes {dimension_semantics = [#tpu.dimension_semantics<parallel>, #tpu.dimension_semantics<parallel>], iteration_bounds = array<i64: 2, 4>, scalar_prefetch = 0 : i64, scratch_operands = 0 : i64, tpu.core_type = #tpu.core_type<tc>, window_params = [{transform_indices = @transform_0, window_bounds = array<i64: 1, 8, 16>}, {transform_indices = @transform_1, window_bounds = array<i64: 1, 8, 16>}, {pipeline_mode = #tpu.pipeline_mode<synchronous>, transform_indices = @transform_2, window_bounds = array<i64: 48, 16>}, {pipeline_mode = #tpu.pipeline_mode<synchronous>, transform_indices = @transform_3, window_bounds = array<i64: 1, 16>}, {pipeline_mode = #tpu.pipeline_mode<synchronous>, transform_indices = @transform_4, window_bounds = array<i64: 16, 16>}, {pipeline_mode = #tpu.pipeline_mode<synchronous>, transform_indices = @transform_5, window_bounds = array<i64: 1, 16>}, {transform_indices = @transform_6, window_bounds = array<i64: 1, 8, 16>}]} {
    %c0 = arith.constant 0 : index
    %c0_0 = arith.constant 0 : index
    %c0_1 = arith.constant 0 : index
    %0 = vector.load %arg2[%c0, %c0_0, %c0_1] : memref<1x8x16xf32, #tpu.memory_space<vmem>>, vector<1x8x16xf32>
    %1 = vector.shape_cast %0 : vector<1x8x16xf32> to vector<8x16xf32>
    %c0_2 = arith.constant 0 : index
    %c0_3 = arith.constant 0 : index
    %c0_4 = arith.constant 0 : index
    %2 = vector.load %arg3[%c0_2, %c0_3, %c0_4] : memref<1x8x16xf32, #tpu.memory_space<vmem>>, vector<1x8x16xf32>
    %3 = vector.shape_cast %2 : vector<1x8x16xf32> to vector<8x16xf32>
    %4 = tpu.concatenate %1, %3 in 0 : vector<8x16xf32>, vector<8x16xf32> -> vector<16x16xf32>
    %cst = arith.constant 0.000000e+00 : f32
    %5 = vector.broadcast %cst : f32 to vector<16x16xf32>
    %6 = arith.cmpf ogt, %4, %5 : vector<16x16xf32>
    %cst_5 = arith.constant 2.000000e-01 : f32
    %7 = vector.broadcast %cst_5 : f32 to vector<16x16xf32>
    %8 = arith.mulf %7, %4 : vector<16x16xf32>
    %9 = arith.select %6, %4, %8 : vector<16x16xi1>, vector<16x16xf32>
    %10 = arith.truncf %9 : vector<16x16xf32> to vector<16x16xbf16>
    %11 = vector.extract_strided_slice %10 {offsets = [0, 0], sizes = [8, 16], strides = [1, 1]} : vector<16x16xbf16> to vector<8x16xbf16>
    %12 = vector.extract_strided_slice %10 {offsets = [1, 0], sizes = [8, 16], strides = [1, 1]} : vector<16x16xbf16> to vector<8x16xbf16>
    %13 = vector.extract_strided_slice %10 {offsets = [2, 0], sizes = [8, 16], strides = [1, 1]} : vector<16x16xbf16> to vector<8x16xbf16>
    %14 = tpu.concatenate %11, %12, %13 in 1 : vector<8x16xbf16>, vector<8x16xbf16>, vector<8x16xbf16> -> vector<8x48xbf16>
    %c0_6 = arith.constant 0 : index
    %c0_7 = arith.constant 0 : index
    %15 = vector.load %arg4[%c0_6, %c0_7] : memref<48x16xbf16, #tpu.memory_space<vmem>>, vector<48x16xbf16>
    %cst_8 = arith.constant dense<0.000000e+00> : vector<8x16xf32>
    %16 = tpu.matmul %14, %15, %cst_8 {dimension_numbers = #tpu.dot_dimension_numbers<[1], [0], [0], [1], [0, 0, 1, 1], [], []>} : vector<8x48xbf16>, vector<48x16xbf16>, vector<8x16xf32> -> vector<8x16xf32>
    %c0_9 = arith.constant 0 : index
    %c0_10 = arith.constant 0 : index
    %17 = vector.load %arg5[%c0_9, %c0_10] : memref<1x16xf32, #tpu.memory_space<vmem>>, vector<1x16xf32>
    %18 = vector.broadcast %17 : vector<1x16xf32> to vector<8x16xf32>
    %19 = arith.addf %16, %18 : vector<8x16xf32>
    %cst_11 = arith.constant 0.000000e+00 : f32
    %20 = vector.broadcast %cst_11 : f32 to vector<8x16xf32>
    %21 = arith.cmpf ogt, %19, %20 : vector<8x16xf32>
    %cst_12 = arith.constant 2.000000e-01 : f32
    %22 = vector.broadcast %cst_12 : f32 to vector<8x16xf32>
    %23 = arith.mulf %22, %19 : vector<8x16xf32>
    %24 = arith.select %21, %19, %23 : vector<8x16xi1>, vector<8x16xf32>
    %25 = arith.truncf %24 : vector<8x16xf32> to vector<8x16xbf16>
    %c0_13 = arith.constant 0 : index
    %c0_14 = arith.constant 0 : index
    %26 = vector.load %arg6[%c0_13, %c0_14] : memref<16x16xbf16, #tpu.memory_space<vmem>>, vector<16x16xbf16>
    %cst_15 = arith.constant dense<0.000000e+00> : vector<8x16xf32>
    %27 = tpu.matmul %25, %26, %cst_15 {dimension_numbers = #tpu.dot_dimension_numbers<[1], [0], [0], [1], [0, 0, 1, 1], [], []>} : vector<8x16xbf16>, vector<16x16xbf16>, vector<8x16xf32> -> vector<8x16xf32>
    %c0_16 = arith.constant 0 : index
    %c0_17 = arith.constant 0 : index
    %28 = vector.load %arg7[%c0_16, %c0_17] : memref<1x16xf32, #tpu.memory_space<vmem>>, vector<1x16xf32>
    %29 = vector.broadcast %28 : vector<1x16xf32> to vector<8x16xf32>
    %30 = arith.addf %27, %29 : vector<8x16xf32>
    %31 = vector.extract_strided_slice %4 {offsets = [1, 0], sizes = [8, 16], strides = [1, 1]} : vector<16x16xf32> to vector<8x16xf32>
    %32 = arith.addf %31, %30 : vector<8x16xf32>
    %c0_18 = arith.constant 0 : index
    %c0_19 = arith.constant 0 : index
    %c0_20 = arith.constant 0 : index
    %33 = vector.load %arg8[%c0_18, %c0_19, %c0_20] : memref<1x8x16xf32, #tpu.memory_space<vmem>>, vector<1x8x16xf32>
    %34 = vector.shape_cast %33 : vector<1x8x16xf32> to vector<8x16xf32>
    %35 = vector.shape_cast %32 : vector<8x16xf32> to vector<1x8x16xf32>
    tpu.vector_store %arg8[%c0_18, %c0_19, %c0_20], %35 {strides = array<i32>} : memref<1x8x16xf32, #tpu.memory_space<vmem>>, vector<1x8x16xf32>,
    return
  }
  func.func @transform_0(%arg0: i32, %arg1: i32) -> (i32, i32, i32) {
    %c0_i32 = arith.constant 0 : i32
    %c0_i32_0 = arith.constant 0 : i32
    return %arg0, %arg1, %c0_i32 : i32, i32, i32
  }
  func.func @transform_1(%arg0: i32, %arg1: i32) -> (i32, i32, i32) {
    %c1_i32 = arith.constant 1 : i32
    %0 = arith.addi %arg1, %c1_i32 : i32
    %c1_i32_0 = arith.constant 1 : i32
    %1 = arith.muli %0, %c1_i32_0 : i32
    %c0_i32 = arith.constant 0 : i32
    %c0_i32_1 = arith.constant 0 : i32
    return %arg0, %1, %c0_i32 : i32, i32, i32
  }
  func.func @transform_2(%arg0: i32, %arg1: i32) -> (i32, i32) {
    %c0_i32 = arith.constant 0 : i32
    %c0_i32_0 = arith.constant 0 : i32
    %c0_i32_1 = arith.constant 0 : i32
    return %c0_i32, %c0_i32_0 : i32, i32
  }
  func.func @transform_3(%arg0: i32, %arg1: i32) -> (i32, i32) {
    %c0_i32 = arith.constant 0 : i32
    %c0_i32_0 = arith.constant 0 : i32
    %c0_i32_1 = arith.constant 0 : i32
    return %c0_i32, %c0_i32_0 : i32, i32
  }
  func.func @transform_4(%arg0: i32, %arg1: i32) -> (i32, i32) {
    %c0_i32 = arith.constant 0 : i32
    %c0_i32_0 = arith.constant 0 : i32
    %c0_i32_1 = arith.constant 0 : i32
    return %c0_i32, %c0_i32_0 : i32, i32
  }
  func.func @transform_5(%arg0: i32, %arg1: i32) -> (i32, i32) {
    %c0_i32 = arith.constant 0 : i32
    %c0_i32_0 = arith.constant 0 : i32
    %c0_i32_1 = arith.constant 0 : i32
    return %c0_i32, %c0_i32_0 : i32, i32
  }
  func.func @transform_6(%arg0: i32, %arg1: i32) -> (i32, i32, i32) {
    %c0_i32 = arith.constant 0 : i32
    %c0_i32_0 = arith.constant 0 : i32
    return %arg0, %arg1, %c0_i32 : i32, i32, i32
  }
}

module attributes {stable_mosaic.version = 11 : i64} {
  func.func @_dilated_unit_kernel(%arg0: i32, %arg1: i32, %arg2: memref<1x8x16xf32, #tpu.memory_space<vmem>>, %arg3: memref<1x8x16xf32, #tpu.memory_space<vmem>>, %arg4: memref<48x16xbf16, #tpu.memory_space<vmem>>, %arg5: memref<1x16xf32, #tpu.memory_space<vmem>>, %arg6: memref<16x16xbf16, #tpu.memory_space<vmem>>, %arg7: memref<1x16xf32, #tpu.memory_space<vmem>>, %arg8: memref<1x8x16xf32, #tpu.memory_space<vmem>>) attributes {dimension_semantics = [#tpu.dimension_semantics<parallel>, #tpu.dimension_semantics<parallel>], iteration_bounds = array<i64: 2, 4>, scalar_prefetch = 0 : i64, scratch_operands = 0 : i64, tpu.core_type = #tpu.core_type<tc>, window_params = [{transform_indices = @transform_0, window_bounds = array<i64: 1, 8, 16>}, {transform_indices = @transform_1, window_bounds = array<i64: 1, 8, 16>}, {pipeline_mode = #tpu.pipeline_mode<synchronous>, transform_indices = @transform_2, window_bounds = array<i64: 48, 16>}, {pipeline_mode = #tpu.pipeline_mode<synchronous>, transform_indices = @transform_3, window_bounds = array<i64: 1, 16>}, {pipeline_mode = #tpu.pipeline_mode<synchronous>, transform_indices = @transform_4, window_bounds = array<i64: 16, 16>}, {pipeline_mode = #tpu.pipeline_mode<synchronous>, transform_indices = @transform_5, window_bounds = array<i64: 1, 16>}, {transform_indices = @transform_6, window_bounds = array<i64: 1, 8, 16>}]} {
    %c0 = arith.constant 0 : index
    %c0_0 = arith.constant 0 : index
    %c0_1 = arith.constant 0 : index
    %0 = vector.load %arg2[%c0, %c0_0, %c0_1] : memref<1x8x16xf32, #tpu.memory_space<vmem>>, vector<1x8x16xf32>
    %1 = vector.shape_cast %0 : vector<1x8x16xf32> to vector<8x16xf32>
    %c0_2 = arith.constant 0 : index
    %c0_3 = arith.constant 0 : index
    %c0_4 = arith.constant 0 : index
    %2 = vector.load %arg3[%c0_2, %c0_3, %c0_4] : memref<1x8x16xf32, #tpu.memory_space<vmem>>, vector<1x8x16xf32>
    %3 = vector.shape_cast %2 : vector<1x8x16xf32> to vector<8x16xf32>
    %4 = tpu.concatenate %1, %3 in 0 : vector<8x16xf32>, vector<8x16xf32> -> vector<16x16xf32>
    %cst = arith.constant 0.000000e+00 : f32
    %5 = vector.broadcast %cst : f32 to vector<16x16xf32>
    %6 = arith.cmpf ogt, %4, %5 : vector<16x16xf32>
    %cst_5 = arith.constant 2.000000e-01 : f32
    %7 = vector.broadcast %cst_5 : f32 to vector<16x16xf32>
    %8 = arith.mulf %7, %4 : vector<16x16xf32>
    %9 = arith.select %6, %4, %8 : vector<16x16xi1>, vector<16x16xf32>
    %10 = arith.truncf %9 : vector<16x16xf32> to vector<16x16xbf16>
    %11 = vector.extract_strided_slice %10 {offsets = [0, 0], sizes = [8, 16], strides = [1, 1]} : vector<16x16xbf16> to vector<8x16xbf16>
    %12 = vector.extract_strided_slice %10 {offsets = [3, 0], sizes = [8, 16], strides = [1, 1]} : vector<16x16xbf16> to vector<8x16xbf16>
    %13 = vector.extract_strided_slice %10 {offsets = [6, 0], sizes = [8, 16], strides = [1, 1]} : vector<16x16xbf16> to vector<8x16xbf16>
    %14 = tpu.concatenate %11, %12, %13 in 1 : vector<8x16xbf16>, vector<8x16xbf16>, vector<8x16xbf16> -> vector<8x48xbf16>
    %c0_6 = arith.constant 0 : index
    %c0_7 = arith.constant 0 : index
    %15 = vector.load %arg4[%c0_6, %c0_7] : memref<48x16xbf16, #tpu.memory_space<vmem>>, vector<48x16xbf16>
    %cst_8 = arith.constant dense<0.000000e+00> : vector<8x16xf32>
    %16 = tpu.matmul %14, %15, %cst_8 {dimension_numbers = #tpu.dot_dimension_numbers<[1], [0], [0], [1], [0, 0, 1, 1], [], []>} : vector<8x48xbf16>, vector<48x16xbf16>, vector<8x16xf32> -> vector<8x16xf32>
    %c0_9 = arith.constant 0 : index
    %c0_10 = arith.constant 0 : index
    %17 = vector.load %arg5[%c0_9, %c0_10] : memref<1x16xf32, #tpu.memory_space<vmem>>, vector<1x16xf32>
    %18 = vector.broadcast %17 : vector<1x16xf32> to vector<8x16xf32>
    %19 = arith.addf %16, %18 : vector<8x16xf32>
    %cst_11 = arith.constant 0.000000e+00 : f32
    %20 = vector.broadcast %cst_11 : f32 to vector<8x16xf32>
    %21 = arith.cmpf ogt, %19, %20 : vector<8x16xf32>
    %cst_12 = arith.constant 2.000000e-01 : f32
    %22 = vector.broadcast %cst_12 : f32 to vector<8x16xf32>
    %23 = arith.mulf %22, %19 : vector<8x16xf32>
    %24 = arith.select %21, %19, %23 : vector<8x16xi1>, vector<8x16xf32>
    %25 = arith.truncf %24 : vector<8x16xf32> to vector<8x16xbf16>
    %c0_13 = arith.constant 0 : index
    %c0_14 = arith.constant 0 : index
    %26 = vector.load %arg6[%c0_13, %c0_14] : memref<16x16xbf16, #tpu.memory_space<vmem>>, vector<16x16xbf16>
    %cst_15 = arith.constant dense<0.000000e+00> : vector<8x16xf32>
    %27 = tpu.matmul %25, %26, %cst_15 {dimension_numbers = #tpu.dot_dimension_numbers<[1], [0], [0], [1], [0, 0, 1, 1], [], []>} : vector<8x16xbf16>, vector<16x16xbf16>, vector<8x16xf32> -> vector<8x16xf32>
    %c0_16 = arith.constant 0 : index
    %c0_17 = arith.constant 0 : index
    %28 = vector.load %arg7[%c0_16, %c0_17] : memref<1x16xf32, #tpu.memory_space<vmem>>, vector<1x16xf32>
    %29 = vector.broadcast %28 : vector<1x16xf32> to vector<8x16xf32>
    %30 = arith.addf %27, %29 : vector<8x16xf32>
    %31 = vector.extract_strided_slice %4 {offsets = [3, 0], sizes = [8, 16], strides = [1, 1]} : vector<16x16xf32> to vector<8x16xf32>
    %32 = arith.addf %31, %30 : vector<8x16xf32>
    %c0_18 = arith.constant 0 : index
    %c0_19 = arith.constant 0 : index
    %c0_20 = arith.constant 0 : index
    %33 = vector.load %arg8[%c0_18, %c0_19, %c0_20] : memref<1x8x16xf32, #tpu.memory_space<vmem>>, vector<1x8x16xf32>
    %34 = vector.shape_cast %33 : vector<1x8x16xf32> to vector<8x16xf32>
    %35 = vector.shape_cast %32 : vector<8x16xf32> to vector<1x8x16xf32>
    tpu.vector_store %arg8[%c0_18, %c0_19, %c0_20], %35 {strides = array<i32>} : memref<1x8x16xf32, #tpu.memory_space<vmem>>, vector<1x8x16xf32>,
    return
  }
  func.func @transform_0(%arg0: i32, %arg1: i32) -> (i32, i32, i32) {
    %c0_i32 = arith.constant 0 : i32
    %c0_i32_0 = arith.constant 0 : i32
    return %arg0, %arg1, %c0_i32 : i32, i32, i32
  }
  func.func @transform_1(%arg0: i32, %arg1: i32) -> (i32, i32, i32) {
    %c1_i32 = arith.constant 1 : i32
    %0 = arith.addi %arg1, %c1_i32 : i32
    %c1_i32_0 = arith.constant 1 : i32
    %1 = arith.muli %0, %c1_i32_0 : i32
    %c0_i32 = arith.constant 0 : i32
    %c0_i32_1 = arith.constant 0 : i32
    return %arg0, %1, %c0_i32 : i32, i32, i32
  }
  func.func @transform_2(%arg0: i32, %arg1: i32) -> (i32, i32) {
    %c0_i32 = arith.constant 0 : i32
    %c0_i32_0 = arith.constant 0 : i32
    %c0_i32_1 = arith.constant 0 : i32
    return %c0_i32, %c0_i32_0 : i32, i32
  }
  func.func @transform_3(%arg0: i32, %arg1: i32) -> (i32, i32) {
    %c0_i32 = arith.constant 0 : i32
    %c0_i32_0 = arith.constant 0 : i32
    %c0_i32_1 = arith.constant 0 : i32
    return %c0_i32, %c0_i32_0 : i32, i32
  }
  func.func @transform_4(%arg0: i32, %arg1: i32) -> (i32, i32) {
    %c0_i32 = arith.constant 0 : i32
    %c0_i32_0 = arith.constant 0 : i32
    %c0_i32_1 = arith.constant 0 : i32
    return %c0_i32, %c0_i32_0 : i32, i32
  }
  func.func @transform_5(%arg0: i32, %arg1: i32) -> (i32, i32) {
    %c0_i32 = arith.constant 0 : i32
    %c0_i32_0 = arith.constant 0 : i32
    %c0_i32_1 = arith.constant 0 : i32
    return %c0_i32, %c0_i32_0 : i32, i32
  }
  func.func @transform_6(%arg0: i32, %arg1: i32) -> (i32, i32, i32) {
    %c0_i32 = arith.constant 0 : i32
    %c0_i32_0 = arith.constant 0 : i32
    return %arg0, %arg1, %c0_i32 : i32, i32, i32
  }
}

module attributes {stable_mosaic.version = 11 : i64} {
  func.func @_dilated_unit_kernel(%arg0: i32, %arg1: i32, %arg2: memref<1x8x8xf32, #tpu.memory_space<vmem>>, %arg3: memref<1x8x8xf32, #tpu.memory_space<vmem>>, %arg4: memref<24x8xbf16, #tpu.memory_space<vmem>>, %arg5: memref<1x8xf32, #tpu.memory_space<vmem>>, %arg6: memref<8x8xbf16, #tpu.memory_space<vmem>>, %arg7: memref<1x8xf32, #tpu.memory_space<vmem>>, %arg8: memref<1x8x8xf32, #tpu.memory_space<vmem>>) attributes {dimension_semantics = [#tpu.dimension_semantics<parallel>, #tpu.dimension_semantics<parallel>], iteration_bounds = array<i64: 2, 8>, scalar_prefetch = 0 : i64, scratch_operands = 0 : i64, tpu.core_type = #tpu.core_type<tc>, window_params = [{transform_indices = @transform_0, window_bounds = array<i64: 1, 8, 8>}, {transform_indices = @transform_1, window_bounds = array<i64: 1, 8, 8>}, {pipeline_mode = #tpu.pipeline_mode<synchronous>, transform_indices = @transform_2, window_bounds = array<i64: 24, 8>}, {pipeline_mode = #tpu.pipeline_mode<synchronous>, transform_indices = @transform_3, window_bounds = array<i64: 1, 8>}, {pipeline_mode = #tpu.pipeline_mode<synchronous>, transform_indices = @transform_4, window_bounds = array<i64: 8, 8>}, {pipeline_mode = #tpu.pipeline_mode<synchronous>, transform_indices = @transform_5, window_bounds = array<i64: 1, 8>}, {transform_indices = @transform_6, window_bounds = array<i64: 1, 8, 8>}]} {
    %c0 = arith.constant 0 : index
    %c0_0 = arith.constant 0 : index
    %c0_1 = arith.constant 0 : index
    %0 = vector.load %arg2[%c0, %c0_0, %c0_1] : memref<1x8x8xf32, #tpu.memory_space<vmem>>, vector<1x8x8xf32>
    %1 = vector.shape_cast %0 : vector<1x8x8xf32> to vector<8x8xf32>
    %c0_2 = arith.constant 0 : index
    %c0_3 = arith.constant 0 : index
    %c0_4 = arith.constant 0 : index
    %2 = vector.load %arg3[%c0_2, %c0_3, %c0_4] : memref<1x8x8xf32, #tpu.memory_space<vmem>>, vector<1x8x8xf32>
    %3 = vector.shape_cast %2 : vector<1x8x8xf32> to vector<8x8xf32>
    %4 = tpu.concatenate %1, %3 in 0 : vector<8x8xf32>, vector<8x8xf32> -> vector<16x8xf32>
    %cst = arith.constant 0.000000e+00 : f32
    %5 = vector.broadcast %cst : f32 to vector<16x8xf32>
    %6 = arith.cmpf ogt, %4, %5 : vector<16x8xf32>
    %cst_5 = arith.constant 2.000000e-01 : f32
    %7 = vector.broadcast %cst_5 : f32 to vector<16x8xf32>
    %8 = arith.mulf %7, %4 : vector<16x8xf32>
    %9 = arith.select %6, %4, %8 : vector<16x8xi1>, vector<16x8xf32>
    %10 = arith.truncf %9 : vector<16x8xf32> to vector<16x8xbf16>
    %11 = vector.extract_strided_slice %10 {offsets = [0, 0], sizes = [8, 8], strides = [1, 1]} : vector<16x8xbf16> to vector<8x8xbf16>
    %12 = vector.extract_strided_slice %10 {offsets = [1, 0], sizes = [8, 8], strides = [1, 1]} : vector<16x8xbf16> to vector<8x8xbf16>
    %13 = vector.extract_strided_slice %10 {offsets = [2, 0], sizes = [8, 8], strides = [1, 1]} : vector<16x8xbf16> to vector<8x8xbf16>
    %14 = tpu.concatenate %11, %12, %13 in 1 : vector<8x8xbf16>, vector<8x8xbf16>, vector<8x8xbf16> -> vector<8x24xbf16>
    %c0_6 = arith.constant 0 : index
    %c0_7 = arith.constant 0 : index
    %15 = vector.load %arg4[%c0_6, %c0_7] : memref<24x8xbf16, #tpu.memory_space<vmem>>, vector<24x8xbf16>
    %cst_8 = arith.constant dense<0.000000e+00> : vector<8x8xf32>
    %16 = tpu.matmul %14, %15, %cst_8 {dimension_numbers = #tpu.dot_dimension_numbers<[1], [0], [0], [1], [0, 0, 1, 1], [], []>} : vector<8x24xbf16>, vector<24x8xbf16>, vector<8x8xf32> -> vector<8x8xf32>
    %c0_9 = arith.constant 0 : index
    %c0_10 = arith.constant 0 : index
    %17 = vector.load %arg5[%c0_9, %c0_10] : memref<1x8xf32, #tpu.memory_space<vmem>>, vector<1x8xf32>
    %18 = vector.broadcast %17 : vector<1x8xf32> to vector<8x8xf32>
    %19 = arith.addf %16, %18 : vector<8x8xf32>
    %cst_11 = arith.constant 0.000000e+00 : f32
    %20 = vector.broadcast %cst_11 : f32 to vector<8x8xf32>
    %21 = arith.cmpf ogt, %19, %20 : vector<8x8xf32>
    %cst_12 = arith.constant 2.000000e-01 : f32
    %22 = vector.broadcast %cst_12 : f32 to vector<8x8xf32>
    %23 = arith.mulf %22, %19 : vector<8x8xf32>
    %24 = arith.select %21, %19, %23 : vector<8x8xi1>, vector<8x8xf32>
    %25 = arith.truncf %24 : vector<8x8xf32> to vector<8x8xbf16>
    %c0_13 = arith.constant 0 : index
    %c0_14 = arith.constant 0 : index
    %26 = vector.load %arg6[%c0_13, %c0_14] : memref<8x8xbf16, #tpu.memory_space<vmem>>, vector<8x8xbf16>
    %cst_15 = arith.constant dense<0.000000e+00> : vector<8x8xf32>
    %27 = tpu.matmul %25, %26, %cst_15 {dimension_numbers = #tpu.dot_dimension_numbers<[1], [0], [0], [1], [0, 0, 1, 1], [], []>} : vector<8x8xbf16>, vector<8x8xbf16>, vector<8x8xf32> -> vector<8x8xf32>
    %c0_16 = arith.constant 0 : index
    %c0_17 = arith.constant 0 : index
    %28 = vector.load %arg7[%c0_16, %c0_17] : memref<1x8xf32, #tpu.memory_space<vmem>>, vector<1x8xf32>
    %29 = vector.broadcast %28 : vector<1x8xf32> to vector<8x8xf32>
    %30 = arith.addf %27, %29 : vector<8x8xf32>
    %31 = vector.extract_strided_slice %4 {offsets = [1, 0], sizes = [8, 8], strides = [1, 1]} : vector<16x8xf32> to vector<8x8xf32>
    %32 = arith.addf %31, %30 : vector<8x8xf32>
    %c0_18 = arith.constant 0 : index
    %c0_19 = arith.constant 0 : index
    %c0_20 = arith.constant 0 : index
    %33 = vector.load %arg8[%c0_18, %c0_19, %c0_20] : memref<1x8x8xf32, #tpu.memory_space<vmem>>, vector<1x8x8xf32>
    %34 = vector.shape_cast %33 : vector<1x8x8xf32> to vector<8x8xf32>
    %35 = vector.shape_cast %32 : vector<8x8xf32> to vector<1x8x8xf32>
    tpu.vector_store %arg8[%c0_18, %c0_19, %c0_20], %35 {strides = array<i32>} : memref<1x8x8xf32, #tpu.memory_space<vmem>>, vector<1x8x8xf32>,
    return
  }
  func.func @transform_0(%arg0: i32, %arg1: i32) -> (i32, i32, i32) {
    %c0_i32 = arith.constant 0 : i32
    %c0_i32_0 = arith.constant 0 : i32
    return %arg0, %arg1, %c0_i32 : i32, i32, i32
  }
  func.func @transform_1(%arg0: i32, %arg1: i32) -> (i32, i32, i32) {
    %c1_i32 = arith.constant 1 : i32
    %0 = arith.addi %arg1, %c1_i32 : i32
    %c1_i32_0 = arith.constant 1 : i32
    %1 = arith.muli %0, %c1_i32_0 : i32
    %c0_i32 = arith.constant 0 : i32
    %c0_i32_1 = arith.constant 0 : i32
    return %arg0, %1, %c0_i32 : i32, i32, i32
  }
  func.func @transform_2(%arg0: i32, %arg1: i32) -> (i32, i32) {
    %c0_i32 = arith.constant 0 : i32
    %c0_i32_0 = arith.constant 0 : i32
    %c0_i32_1 = arith.constant 0 : i32
    return %c0_i32, %c0_i32_0 : i32, i32
  }
  func.func @transform_3(%arg0: i32, %arg1: i32) -> (i32, i32) {
    %c0_i32 = arith.constant 0 : i32
    %c0_i32_0 = arith.constant 0 : i32
    %c0_i32_1 = arith.constant 0 : i32
    return %c0_i32, %c0_i32_0 : i32, i32
  }
  func.func @transform_4(%arg0: i32, %arg1: i32) -> (i32, i32) {
    %c0_i32 = arith.constant 0 : i32
    %c0_i32_0 = arith.constant 0 : i32
    %c0_i32_1 = arith.constant 0 : i32
    return %c0_i32, %c0_i32_0 : i32, i32
  }
  func.func @transform_5(%arg0: i32, %arg1: i32) -> (i32, i32) {
    %c0_i32 = arith.constant 0 : i32
    %c0_i32_0 = arith.constant 0 : i32
    %c0_i32_1 = arith.constant 0 : i32
    return %c0_i32, %c0_i32_0 : i32, i32
  }
  func.func @transform_6(%arg0: i32, %arg1: i32) -> (i32, i32, i32) {
    %c0_i32 = arith.constant 0 : i32
    %c0_i32_0 = arith.constant 0 : i32
    return %arg0, %arg1, %c0_i32 : i32, i32, i32
  }
}

module attributes {stable_mosaic.version = 11 : i64} {
  func.func @_upsample_kernel(%arg0: i32, %arg1: i32, %arg2: memref<1x8x16xf32, #tpu.memory_space<vmem>>, %arg3: memref<1x8x16xf32, #tpu.memory_space<vmem>>, %arg4: memref<16x32xbf16, #tpu.memory_space<vmem>>, %arg5: memref<1x16xf32, #tpu.memory_space<vmem>>, %arg6: memref<1x8x16xf32, #tpu.memory_space<vmem>>) attributes {dimension_semantics = [#tpu.dimension_semantics<parallel>, #tpu.dimension_semantics<parallel>], iteration_bounds = array<i64: 2, 4>, scalar_prefetch = 0 : i64, scratch_operands = 0 : i64, tpu.core_type = #tpu.core_type<tc>, window_params = [{transform_indices = @transform_0, window_bounds = array<i64: 1, 8, 16>}, {transform_indices = @transform_1, window_bounds = array<i64: 1, 8, 16>}, {pipeline_mode = #tpu.pipeline_mode<synchronous>, transform_indices = @transform_2, window_bounds = array<i64: 16, 32>}, {pipeline_mode = #tpu.pipeline_mode<synchronous>, transform_indices = @transform_3, window_bounds = array<i64: 1, 16>}, {transform_indices = @transform_4, window_bounds = array<i64: 1, 8, 16>}]} {
    %c0 = arith.constant 0 : index
    %c0_0 = arith.constant 0 : index
    %c0_1 = arith.constant 0 : index
    %0 = vector.load %arg2[%c0, %c0_0, %c0_1] : memref<1x8x16xf32, #tpu.memory_space<vmem>>, vector<1x8x16xf32>
    %1 = vector.shape_cast %0 : vector<1x8x16xf32> to vector<8x16xf32>
    %c0_2 = arith.constant 0 : index
    %c0_3 = arith.constant 0 : index
    %c0_4 = arith.constant 0 : index
    %2 = vector.load %arg3[%c0_2, %c0_3, %c0_4] : memref<1x8x16xf32, #tpu.memory_space<vmem>>, vector<1x8x16xf32>
    %3 = vector.shape_cast %2 : vector<1x8x16xf32> to vector<8x16xf32>
    %4 = tpu.concatenate %1, %3 in 0 : vector<8x16xf32>, vector<8x16xf32> -> vector<16x16xf32>
    %cst = arith.constant 0.000000e+00 : f32
    %5 = vector.broadcast %cst : f32 to vector<16x16xf32>
    %6 = arith.cmpf ogt, %4, %5 : vector<16x16xf32>
    %cst_5 = arith.constant 2.000000e-01 : f32
    %7 = vector.broadcast %cst_5 : f32 to vector<16x16xf32>
    %8 = arith.mulf %7, %4 : vector<16x16xf32>
    %9 = arith.select %6, %4, %8 : vector<16x16xi1>, vector<16x16xf32>
    %10 = arith.truncf %9 : vector<16x16xf32> to vector<16x16xbf16>
    %c0_6 = arith.constant 0 : index
    %c0_7 = arith.constant 0 : index
    %11 = vector.load %arg4[%c0_6, %c0_7] : memref<16x32xbf16, #tpu.memory_space<vmem>>, vector<16x32xbf16>
    %cst_8 = arith.constant dense<0.000000e+00> : vector<16x32xf32>
    %12 = tpu.matmul %10, %11, %cst_8 {dimension_numbers = #tpu.dot_dimension_numbers<[1], [0], [0], [1], [0, 0, 1, 1], [], []>} : vector<16x16xbf16>, vector<16x32xbf16>, vector<16x32xf32> -> vector<16x32xf32>
    %13 = vector.extract_strided_slice %12 {offsets = [1, 8], sizes = [8, 8], strides = [1, 1]} : vector<16x32xf32> to vector<8x8xf32>
    %14 = vector.extract_strided_slice %12 {offsets = [0, 24], sizes = [8, 8], strides = [1, 1]} : vector<16x32xf32> to vector<8x8xf32>
    %15 = arith.addf %13, %14 : vector<8x8xf32>
    %16 = vector.extract_strided_slice %12 {offsets = [2, 0], sizes = [8, 8], strides = [1, 1]} : vector<16x32xf32> to vector<8x8xf32>
    %17 = vector.extract_strided_slice %12 {offsets = [1, 16], sizes = [8, 8], strides = [1, 1]} : vector<16x32xf32> to vector<8x8xf32>
    %18 = arith.addf %16, %17 : vector<8x8xf32>
    %19 = tpu.concatenate %15, %18 in 1 : vector<8x8xf32>, vector<8x8xf32> -> vector<8x16xf32>
    %c0_9 = arith.constant 0 : index
    %c0_10 = arith.constant 0 : index
    %20 = vector.load %arg5[%c0_9, %c0_10] : memref<1x16xf32, #tpu.memory_space<vmem>>, vector<1x16xf32>
    %21 = vector.broadcast %20 : vector<1x16xf32> to vector<8x16xf32>
    %22 = arith.addf %19, %21 : vector<8x16xf32>
    %c0_11 = arith.constant 0 : index
    %c0_12 = arith.constant 0 : index
    %c0_13 = arith.constant 0 : index
    %23 = vector.load %arg6[%c0_11, %c0_12, %c0_13] : memref<1x8x16xf32, #tpu.memory_space<vmem>>, vector<1x8x16xf32>
    %24 = vector.shape_cast %23 : vector<1x8x16xf32> to vector<8x16xf32>
    %25 = vector.shape_cast %22 : vector<8x16xf32> to vector<1x8x16xf32>
    tpu.vector_store %arg6[%c0_11, %c0_12, %c0_13], %25 {strides = array<i32>} : memref<1x8x16xf32, #tpu.memory_space<vmem>>, vector<1x8x16xf32>,
    return
  }
  func.func @transform_0(%arg0: i32, %arg1: i32) -> (i32, i32, i32) {
    %c0_i32 = arith.constant 0 : i32
    %c0_i32_0 = arith.constant 0 : i32
    return %arg0, %arg1, %c0_i32 : i32, i32, i32
  }
  func.func @transform_1(%arg0: i32, %arg1: i32) -> (i32, i32, i32) {
    %c1_i32 = arith.constant 1 : i32
    %0 = arith.addi %arg1, %c1_i32 : i32
    %c1_i32_0 = arith.constant 1 : i32
    %1 = arith.muli %0, %c1_i32_0 : i32
    %c0_i32 = arith.constant 0 : i32
    %c0_i32_1 = arith.constant 0 : i32
    return %arg0, %1, %c0_i32 : i32, i32, i32
  }
  func.func @transform_2(%arg0: i32, %arg1: i32) -> (i32, i32) {
    %c0_i32 = arith.constant 0 : i32
    %c0_i32_0 = arith.constant 0 : i32
    %c0_i32_1 = arith.constant 0 : i32
    return %c0_i32, %c0_i32_0 : i32, i32
  }
  func.func @transform_3(%arg0: i32, %arg1: i32) -> (i32, i32) {
    %c0_i32 = arith.constant 0 : i32
    %c0_i32_0 = arith.constant 0 : i32
    %c0_i32_1 = arith.constant 0 : i32
    return %c0_i32, %c0_i32_0 : i32, i32
  }
  func.func @transform_4(%arg0: i32, %arg1: i32) -> (i32, i32, i32) {
    %c0_i32 = arith.constant 0 : i32
    %c0_i32_0 = arith.constant 0 : i32
    return %arg0, %arg1, %c0_i32 : i32, i32, i32
  }
}

module attributes {stable_mosaic.version = 11 : i64} {
  func.func @_dilated_unit_kernel(%arg0: i32, %arg1: i32, %arg2: memref<1x8x8xf32, #tpu.memory_space<vmem>>, %arg3: memref<1x8x8xf32, #tpu.memory_space<vmem>>, %arg4: memref<24x8xbf16, #tpu.memory_space<vmem>>, %arg5: memref<1x8xf32, #tpu.memory_space<vmem>>, %arg6: memref<8x8xbf16, #tpu.memory_space<vmem>>, %arg7: memref<1x8xf32, #tpu.memory_space<vmem>>, %arg8: memref<1x8x8xf32, #tpu.memory_space<vmem>>) attributes {dimension_semantics = [#tpu.dimension_semantics<parallel>, #tpu.dimension_semantics<parallel>], iteration_bounds = array<i64: 2, 8>, scalar_prefetch = 0 : i64, scratch_operands = 0 : i64, tpu.core_type = #tpu.core_type<tc>, window_params = [{transform_indices = @transform_0, window_bounds = array<i64: 1, 8, 8>}, {transform_indices = @transform_1, window_bounds = array<i64: 1, 8, 8>}, {pipeline_mode = #tpu.pipeline_mode<synchronous>, transform_indices = @transform_2, window_bounds = array<i64: 24, 8>}, {pipeline_mode = #tpu.pipeline_mode<synchronous>, transform_indices = @transform_3, window_bounds = array<i64: 1, 8>}, {pipeline_mode = #tpu.pipeline_mode<synchronous>, transform_indices = @transform_4, window_bounds = array<i64: 8, 8>}, {pipeline_mode = #tpu.pipeline_mode<synchronous>, transform_indices = @transform_5, window_bounds = array<i64: 1, 8>}, {transform_indices = @transform_6, window_bounds = array<i64: 1, 8, 8>}]} {
    %c0 = arith.constant 0 : index
    %c0_0 = arith.constant 0 : index
    %c0_1 = arith.constant 0 : index
    %0 = vector.load %arg2[%c0, %c0_0, %c0_1] : memref<1x8x8xf32, #tpu.memory_space<vmem>>, vector<1x8x8xf32>
    %1 = vector.shape_cast %0 : vector<1x8x8xf32> to vector<8x8xf32>
    %c0_2 = arith.constant 0 : index
    %c0_3 = arith.constant 0 : index
    %c0_4 = arith.constant 0 : index
    %2 = vector.load %arg3[%c0_2, %c0_3, %c0_4] : memref<1x8x8xf32, #tpu.memory_space<vmem>>, vector<1x8x8xf32>
    %3 = vector.shape_cast %2 : vector<1x8x8xf32> to vector<8x8xf32>
    %4 = tpu.concatenate %1, %3 in 0 : vector<8x8xf32>, vector<8x8xf32> -> vector<16x8xf32>
    %cst = arith.constant 0.000000e+00 : f32
    %5 = vector.broadcast %cst : f32 to vector<16x8xf32>
    %6 = arith.cmpf ogt, %4, %5 : vector<16x8xf32>
    %cst_5 = arith.constant 2.000000e-01 : f32
    %7 = vector.broadcast %cst_5 : f32 to vector<16x8xf32>
    %8 = arith.mulf %7, %4 : vector<16x8xf32>
    %9 = arith.select %6, %4, %8 : vector<16x8xi1>, vector<16x8xf32>
    %10 = arith.truncf %9 : vector<16x8xf32> to vector<16x8xbf16>
    %11 = vector.extract_strided_slice %10 {offsets = [0, 0], sizes = [8, 8], strides = [1, 1]} : vector<16x8xbf16> to vector<8x8xbf16>
    %12 = vector.extract_strided_slice %10 {offsets = [3, 0], sizes = [8, 8], strides = [1, 1]} : vector<16x8xbf16> to vector<8x8xbf16>
    %13 = vector.extract_strided_slice %10 {offsets = [6, 0], sizes = [8, 8], strides = [1, 1]} : vector<16x8xbf16> to vector<8x8xbf16>
    %14 = tpu.concatenate %11, %12, %13 in 1 : vector<8x8xbf16>, vector<8x8xbf16>, vector<8x8xbf16> -> vector<8x24xbf16>
    %c0_6 = arith.constant 0 : index
    %c0_7 = arith.constant 0 : index
    %15 = vector.load %arg4[%c0_6, %c0_7] : memref<24x8xbf16, #tpu.memory_space<vmem>>, vector<24x8xbf16>
    %cst_8 = arith.constant dense<0.000000e+00> : vector<8x8xf32>
    %16 = tpu.matmul %14, %15, %cst_8 {dimension_numbers = #tpu.dot_dimension_numbers<[1], [0], [0], [1], [0, 0, 1, 1], [], []>} : vector<8x24xbf16>, vector<24x8xbf16>, vector<8x8xf32> -> vector<8x8xf32>
    %c0_9 = arith.constant 0 : index
    %c0_10 = arith.constant 0 : index
    %17 = vector.load %arg5[%c0_9, %c0_10] : memref<1x8xf32, #tpu.memory_space<vmem>>, vector<1x8xf32>
    %18 = vector.broadcast %17 : vector<1x8xf32> to vector<8x8xf32>
    %19 = arith.addf %16, %18 : vector<8x8xf32>
    %cst_11 = arith.constant 0.000000e+00 : f32
    %20 = vector.broadcast %cst_11 : f32 to vector<8x8xf32>
    %21 = arith.cmpf ogt, %19, %20 : vector<8x8xf32>
    %cst_12 = arith.constant 2.000000e-01 : f32
    %22 = vector.broadcast %cst_12 : f32 to vector<8x8xf32>
    %23 = arith.mulf %22, %19 : vector<8x8xf32>
    %24 = arith.select %21, %19, %23 : vector<8x8xi1>, vector<8x8xf32>
    %25 = arith.truncf %24 : vector<8x8xf32> to vector<8x8xbf16>
    %c0_13 = arith.constant 0 : index
    %c0_14 = arith.constant 0 : index
    %26 = vector.load %arg6[%c0_13, %c0_14] : memref<8x8xbf16, #tpu.memory_space<vmem>>, vector<8x8xbf16>
    %cst_15 = arith.constant dense<0.000000e+00> : vector<8x8xf32>
    %27 = tpu.matmul %25, %26, %cst_15 {dimension_numbers = #tpu.dot_dimension_numbers<[1], [0], [0], [1], [0, 0, 1, 1], [], []>} : vector<8x8xbf16>, vector<8x8xbf16>, vector<8x8xf32> -> vector<8x8xf32>
    %c0_16 = arith.constant 0 : index
    %c0_17 = arith.constant 0 : index
    %28 = vector.load %arg7[%c0_16, %c0_17] : memref<1x8xf32, #tpu.memory_space<vmem>>, vector<1x8xf32>
    %29 = vector.broadcast %28 : vector<1x8xf32> to vector<8x8xf32>
    %30 = arith.addf %27, %29 : vector<8x8xf32>
    %31 = vector.extract_strided_slice %4 {offsets = [3, 0], sizes = [8, 8], strides = [1, 1]} : vector<16x8xf32> to vector<8x8xf32>
    %32 = arith.addf %31, %30 : vector<8x8xf32>
    %c0_18 = arith.constant 0 : index
    %c0_19 = arith.constant 0 : index
    %c0_20 = arith.constant 0 : index
    %33 = vector.load %arg8[%c0_18, %c0_19, %c0_20] : memref<1x8x8xf32, #tpu.memory_space<vmem>>, vector<1x8x8xf32>
    %34 = vector.shape_cast %33 : vector<1x8x8xf32> to vector<8x8xf32>
    %35 = vector.shape_cast %32 : vector<8x8xf32> to vector<1x8x8xf32>
    tpu.vector_store %arg8[%c0_18, %c0_19, %c0_20], %35 {strides = array<i32>} : memref<1x8x8xf32, #tpu.memory_space<vmem>>, vector<1x8x8xf32>,
    return
  }
  func.func @transform_0(%arg0: i32, %arg1: i32) -> (i32, i32, i32) {
    %c0_i32 = arith.constant 0 : i32
    %c0_i32_0 = arith.constant 0 : i32
    return %arg0, %arg1, %c0_i32 : i32, i32, i32
  }
  func.func @transform_1(%arg0: i32, %arg1: i32) -> (i32, i32, i32) {
    %c1_i32 = arith.constant 1 : i32
    %0 = arith.addi %arg1, %c1_i32 : i32
    %c1_i32_0 = arith.constant 1 : i32
    %1 = arith.muli %0, %c1_i32_0 : i32
    %c0_i32 = arith.constant 0 : i32
    %c0_i32_1 = arith.constant 0 : i32
    return %arg0, %1, %c0_i32 : i32, i32, i32
  }
  func.func @transform_2(%arg0: i32, %arg1: i32) -> (i32, i32) {
    %c0_i32 = arith.constant 0 : i32
    %c0_i32_0 = arith.constant 0 : i32
    %c0_i32_1 = arith.constant 0 : i32
    return %c0_i32, %c0_i32_0 : i32, i32
  }
  func.func @transform_3(%arg0: i32, %arg1: i32) -> (i32, i32) {
    %c0_i32 = arith.constant 0 : i32
    %c0_i32_0 = arith.constant 0 : i32
    %c0_i32_1 = arith.constant 0 : i32
    return %c0_i32, %c0_i32_0 : i32, i32
  }
  func.func @transform_4(%arg0: i32, %arg1: i32) -> (i32, i32) {
    %c0_i32 = arith.constant 0 : i32
    %c0_i32_0 = arith.constant 0 : i32
    %c0_i32_1 = arith.constant 0 : i32
    return %c0_i32, %c0_i32_0 : i32, i32
  }
  func.func @transform_5(%arg0: i32, %arg1: i32) -> (i32, i32) {
    %c0_i32 = arith.constant 0 : i32
    %c0_i32_0 = arith.constant 0 : i32
    %c0_i32_1 = arith.constant 0 : i32
    return %c0_i32, %c0_i32_0 : i32, i32
  }
  func.func @transform_6(%arg0: i32, %arg1: i32) -> (i32, i32, i32) {
    %c0_i32 = arith.constant 0 : i32
    %c0_i32_0 = arith.constant 0 : i32
    return %arg0, %arg1, %c0_i32 : i32, i32, i32
  }
}

module attributes {stable_mosaic.version = 11 : i64} {
  func.func @_conv_kernel(%arg0: i32, %arg1: i32, %arg2: memref<1x8x8xf32, #tpu.memory_space<vmem>>, %arg3: memref<1x8x8xf32, #tpu.memory_space<vmem>>, %arg4: memref<56x1xbf16, #tpu.memory_space<vmem>>, %arg5: memref<1x1xf32, #tpu.memory_space<vmem>>, %arg6: memref<1x8x1xf32, #tpu.memory_space<vmem>>) attributes {dimension_semantics = [#tpu.dimension_semantics<parallel>, #tpu.dimension_semantics<parallel>], iteration_bounds = array<i64: 2, 8>, scalar_prefetch = 0 : i64, scratch_operands = 0 : i64, tpu.core_type = #tpu.core_type<tc>, window_params = [{transform_indices = @transform_0, window_bounds = array<i64: 1, 8, 8>}, {transform_indices = @transform_1, window_bounds = array<i64: 1, 8, 8>}, {pipeline_mode = #tpu.pipeline_mode<synchronous>, transform_indices = @transform_2, window_bounds = array<i64: 56, 1>}, {pipeline_mode = #tpu.pipeline_mode<synchronous>, transform_indices = @transform_3, window_bounds = array<i64: 1, 1>}, {transform_indices = @transform_4, window_bounds = array<i64: 1, 8, 1>}]} {
    %c0 = arith.constant 0 : index
    %c0_0 = arith.constant 0 : index
    %c0_1 = arith.constant 0 : index
    %0 = vector.load %arg2[%c0, %c0_0, %c0_1] : memref<1x8x8xf32, #tpu.memory_space<vmem>>, vector<1x8x8xf32>
    %1 = vector.shape_cast %0 : vector<1x8x8xf32> to vector<8x8xf32>
    %c0_2 = arith.constant 0 : index
    %c0_3 = arith.constant 0 : index
    %c0_4 = arith.constant 0 : index
    %2 = vector.load %arg3[%c0_2, %c0_3, %c0_4] : memref<1x8x8xf32, #tpu.memory_space<vmem>>, vector<1x8x8xf32>
    %3 = vector.shape_cast %2 : vector<1x8x8xf32> to vector<8x8xf32>
    %4 = tpu.concatenate %1, %3 in 0 : vector<8x8xf32>, vector<8x8xf32> -> vector<16x8xf32>
    %cst = arith.constant 0.000000e+00 : f32
    %5 = vector.broadcast %cst : f32 to vector<16x8xf32>
    %6 = arith.cmpf ogt, %4, %5 : vector<16x8xf32>
    %cst_5 = arith.constant 2.000000e-01 : f32
    %7 = vector.broadcast %cst_5 : f32 to vector<16x8xf32>
    %8 = arith.mulf %7, %4 : vector<16x8xf32>
    %9 = arith.select %6, %4, %8 : vector<16x8xi1>, vector<16x8xf32>
    %10 = arith.truncf %9 : vector<16x8xf32> to vector<16x8xbf16>
    %11 = vector.extract_strided_slice %10 {offsets = [0, 0], sizes = [8, 8], strides = [1, 1]} : vector<16x8xbf16> to vector<8x8xbf16>
    %12 = vector.extract_strided_slice %10 {offsets = [1, 0], sizes = [8, 8], strides = [1, 1]} : vector<16x8xbf16> to vector<8x8xbf16>
    %13 = vector.extract_strided_slice %10 {offsets = [2, 0], sizes = [8, 8], strides = [1, 1]} : vector<16x8xbf16> to vector<8x8xbf16>
    %14 = vector.extract_strided_slice %10 {offsets = [3, 0], sizes = [8, 8], strides = [1, 1]} : vector<16x8xbf16> to vector<8x8xbf16>
    %15 = vector.extract_strided_slice %10 {offsets = [4, 0], sizes = [8, 8], strides = [1, 1]} : vector<16x8xbf16> to vector<8x8xbf16>
    %16 = vector.extract_strided_slice %10 {offsets = [5, 0], sizes = [8, 8], strides = [1, 1]} : vector<16x8xbf16> to vector<8x8xbf16>
    %17 = vector.extract_strided_slice %10 {offsets = [6, 0], sizes = [8, 8], strides = [1, 1]} : vector<16x8xbf16> to vector<8x8xbf16>
    %18 = tpu.concatenate %11, %12, %13, %14, %15, %16, %17 in 1 : vector<8x8xbf16>, vector<8x8xbf16>, vector<8x8xbf16>, vector<8x8xbf16>, vector<8x8xbf16>, vector<8x8xbf16>, vector<8x8xbf16> -> vector<8x56xbf16>
    %c0_6 = arith.constant 0 : index
    %c0_7 = arith.constant 0 : index
    %19 = vector.load %arg4[%c0_6, %c0_7] : memref<56x1xbf16, #tpu.memory_space<vmem>>, vector<56x1xbf16>
    %cst_8 = arith.constant dense<0.000000e+00> : vector<8x1xf32>
    %20 = tpu.matmul %18, %19, %cst_8 {dimension_numbers = #tpu.dot_dimension_numbers<[1], [0], [0], [1], [0, 0, 1, 1], [], []>} : vector<8x56xbf16>, vector<56x1xbf16>, vector<8x1xf32> -> vector<8x1xf32>
    %c0_9 = arith.constant 0 : index
    %c0_10 = arith.constant 0 : index
    %21 = vector.load %arg5[%c0_9, %c0_10] : memref<1x1xf32, #tpu.memory_space<vmem>>, vector<1x1xf32>
    %22 = vector.broadcast %21 : vector<1x1xf32> to vector<8x1xf32>
    %23 = arith.addf %20, %22 : vector<8x1xf32>
    %24 = math.tanh %23 : vector<8x1xf32>
    %c0_11 = arith.constant 0 : index
    %c0_12 = arith.constant 0 : index
    %c0_13 = arith.constant 0 : index
    %25 = vector.load %arg6[%c0_11, %c0_12, %c0_13] : memref<1x8x1xf32, #tpu.memory_space<vmem>>, vector<1x8x1xf32>
    %26 = vector.shape_cast %25 : vector<1x8x1xf32> to vector<8x1xf32>
    %27 = vector.shape_cast %24 : vector<8x1xf32> to vector<1x8x1xf32>
    tpu.vector_store %arg6[%c0_11, %c0_12, %c0_13], %27 {strides = array<i32>} : memref<1x8x1xf32, #tpu.memory_space<vmem>>, vector<1x8x1xf32>,
    return
  }
  func.func @transform_0(%arg0: i32, %arg1: i32) -> (i32, i32, i32) {
    %c0_i32 = arith.constant 0 : i32
    %c0_i32_0 = arith.constant 0 : i32
    return %arg0, %arg1, %c0_i32 : i32, i32, i32
  }
  func.func @transform_1(%arg0: i32, %arg1: i32) -> (i32, i32, i32) {
    %c1_i32 = arith.constant 1 : i32
    %0 = arith.addi %arg1, %c1_i32 : i32
    %c1_i32_0 = arith.constant 1 : i32
    %1 = arith.muli %0, %c1_i32_0 : i32
    %c0_i32 = arith.constant 0 : i32
    %c0_i32_1 = arith.constant 0 : i32
    return %arg0, %1, %c0_i32 : i32, i32, i32
  }
  func.func @transform_2(%arg0: i32, %arg1: i32) -> (i32, i32) {
    %c0_i32 = arith.constant 0 : i32
    %c0_i32_0 = arith.constant 0 : i32
    %c0_i32_1 = arith.constant 0 : i32
    return %c0_i32, %c0_i32_0 : i32, i32
  }
  func.func @transform_3(%arg0: i32, %arg1: i32) -> (i32, i32) {
    %c0_i32 = arith.constant 0 : i32
    %c0_i32_0 = arith.constant 0 : i32
    %c0_i32_1 = arith.constant 0 : i32
    return %c0_i32, %c0_i32_0 : i32, i32
  }
  func.func @transform_4(%arg0: i32, %arg1: i32) -> (i32, i32, i32) {
    %c0_i32 = arith.constant 0 : i32
    %c0_i32_0 = arith.constant 0 : i32
    return %arg0, %arg1, %c0_i32 : i32, i32, i32
  }
}

</mosaic_0001>

<bundles_post_ra>
// kernel: tile.14
= control target key start
LH: loop header
LB: loop body
LE: loop exit
PB: predicated region body
PF: predicated region fallthrough
CT: control target
= control target key end

     0   :  { %vm7_vm0 = vcmask 130048   ;;  %vm13_vm1 = vcmask 261248   ;;  %s39_s0 = inlined_call_operand.vmem [shape: f32[2,16], index: 0, kind: input, shape index: {}]   ;;  %s40_s1 = inlined_call_operand.vmem [shape: f32[1,32], index: 1, kind: output, shape index: {}]  }
   0x1   :  { %v4_v0 = vld [vmem:[%s39_s0] sm:$0x3]  ;;  %s22_s0 = smov 16  }
   0x2   :  { %5 = vst [vmem:[#allocation1] sm:$0x3] %v4_v0 }
   0x9   :  { %v10_v1 = vld [vmem:[#allocation1 + $0x1] sm:$0x1]   ;;  %v6_v2 = vld [vmem:[#allocation1] sm:$0x1]  }
   0xa   :  { %11 = vrot.lane.b32.xlu0 %v10_v1, %s22_s0  ;;  %8 = vst.msk [vmem:[#allocation0] sm:$0x1] %vm7_vm0, %v6_v2  }
  0x7c   :  { %v12_v3 = vpop.permute.xlu0 %11  }
  0x7d   :  { %14 = vst.msk [vmem:[#allocation0] sm:$0x1] %vm13_vm1, %v12_v3  }
  0x84   :  { %v17_v4 = vld [vmem:[#allocation0] sm:$0x1] }
  0x85   :  { %20 = vst [vmem:[%s40_s1] sm:$0x1] %v17_v4 }

// kernel: tile.13
= control target key start
LH: loop header
LB: loop body
LE: loop exit
PB: predicated region body
PF: predicated region fallthrough
CT: control target
= control target key end

     0   :  { %s22_s0 = inlined_call_operand.vmem [shape: f32[16], index: 0, kind: input, shape index: {}]   ;;  %s23_s1 = inlined_call_operand.vmem [shape: f32[2,16], index: 1, kind: output, shape index: {}]  }
   0x1   :  { %v4_v0 = vld [vmem:[%s22_s0] ss:$0 sm:$0xff] }
   0x2   :  { %5 = vst [vmem:[%s23_s1] sm:$0x3] %v4_v0 }

// kernel: generator_v2_forward.8
= control target key start
LH: loop header
LB: loop body
LE: loop exit
PB: predicated region body
PF: predicated region fallthrough
CT: control target
= control target key end

     0   :  { %s583_s15 = smov 0   ;;  %s585_s16 = smov 0   ;;  %s660_s0 = inlined_call_operand.vmem [shape: f32[2,24,16], index: 0, kind: input, shape index: {}, may-alias: {0,1}]   ;;  %s661_s1 = inlined_call_operand.vmem [shape: f32[2,24,16], index: 1, kind: input, shape index: {}, may-alias: {0,1}]   ;;  %s662_s2 = inlined_call_operand.vmem [shape: bf16[48,32], index: 2, kind: input, shape index: {}]   ;;  %s663_s3 = inlined_call_operand.vmem [shape: f32[1,32], index: 3, kind: input, shape index: {}]   ;;  %s664_s4 = inlined_call_operand.vmem [shape: f32[2,16,32], index: 4, kind: output, shape index: {}]  }
   0x1   :  { %s587_s17 = smov 0   ;;  %s589_s18 = smov 0  }
   0x2   :  { %s591_s19 = smov 0  }
   0x3 LB: > { %s23_s20 = sadd.s32 1, %s546_s17  ;;  %s26_s21 = sadd.s32 1, %s550_s18  ;;  %s554_s19 = sphi %s591_s19, %s14_s19   ;;  %s550_s18 = sphi %s589_s18, %s668_s18   ;;  %s546_s17 = sphi %s587_s17, %s667_s17   ;;  %s542_s16 = sphi %s585_s16, %s666_s16   ;;  %s538_s15 = sphi %s583_s15, %s665_s15  }
   0x4   : > { %p24_p0 = scmp.ge.s32.totalorder %s23_s20, 2  ;;  %p449_p1 = scmp.ge.s32.totalorder %s554_s19, 1 }
   0x5   : > { %p200_p2 = scmp.lt.s32.totalorder %s554_s19, 5 }
   0x6   : > { %s670_s20 = smov (%p24_p0, %s23_s20), 0  ;;  %s672_s21 = smov (!%p24_p0, %s26_s21), %s550_s18 }
   0x7   : > { %p201_p3 = pnand %p449_p1, %p200_p2  ;;  %p28_p4 = scmp.ge.s32.totalorder %s672_s21, 2 }
   0x8   : > { %p241_p5 = scmp.lt.s32.totalorder (!%p201_p3), %s542_s16, 1  ;;  %p243_p6 = scmp.lt.s32.totalorder (!%p201_p3), %s538_s15, 2 }
   0x9   : > { %s674_s21 = smov (%p28_p4, %s672_s21), 0  ;;  %204 = sbr.rel (%p201_p3) target bundleno = 293 (0x125), region = 36 }
   0xa   : > { %s249_s22 = sadd.s32 (!%p201_p3), 1, %s538_s15  ;;  %s556_s11 = smov (!%p201_p3), 16  }
   0xb   : > { %p252_p7 = scmp.lt.s32.totalorder (!%p201_p3), %s249_s22, 2  ;;  %s557_s12 = smov (!%p201_p3), 32  }
   0xc   : > { %p261_p8 = scmp.lt.s32.totalorder (!%p201_p3), %s538_s15, 1 }
   0xe   : > { %s676_s16 = smov (!%p241_p5, %s542_s16), 1  ;;  %v471_v0 = vld [vmem:[%s662_s2 + $0x10] sm:$0xff]  ;;  %s678_s22 = smov (!%p252_p7, %s249_s22), 2  ;;  %v470_v13 = vld [vmem:[%s662_s2 + $0x8] sm:$0xff]  ;;  %v469_v14 = vld [vmem:[%s662_s2] sm:$0xff]  ;;  %vm289_vm0 = vcmask 130048  }
   0xf   : > { %s244_s23 = scalar_select %p243_p6, %s538_s15, 2  ;;  %332 = vmatpush.bf16.msra.mxu0 %v471_v0  ;;  %vm293_vm1 = vcmask 261120   ;;  %vm324_vm2 = vcmask 392192   ;;  %v515_v19 = vld [vmem:[%s663_s3] ss:$0 sm:$0xff] }
  0x10   : > { %s472_s26 = smul.u32 3, %s676_s16  ;;  %s680_s15 = smov (!%p261_p8, %s538_s15), 1 }
  0x11   : > { %s452_s24 = sshll.u32 %s676_s16, 1 }
  0x12   : > { %s246_s27 = sadd.s32 %s472_s26, %s244_s23  ;;  %s255_s6 = sadd.s32 %s472_s26, %s678_s22 }
  0x13   : > { %s450_s28 = sshll.u32 %s246_s27, 3  ;;  %s451_s7 = sshll.u32 %s255_s6, 3  ;;  %333 = vmatpush.bf16.msra.mxu0 %v470_v13 }
  0x14   : > { %s248_s5 = scalar_lea.vmem %s660_s0, %s450_s28  ;;  %s257_s10 = scalar_lea.vmem %s661_s1, %s451_s7 }
  0x15   : > { %v268_v1 = vld [vmem:[%s248_s5] sm:$0xff]  ;;  %s264_s25 = sadd.s32 %s452_s24, %s680_s15 }
  0x16   : > { %v270_v2 = vpack.c.bf16 %v268_v1, %v268_v1  ;;  %v269_v3 = vld [vmem:[%s257_s10] sm:$0xff]  ;;  %s453_s26 = sshll.u32 %s264_s25, 3 }
  0x17   : > { %v271_v4 = vpack.c.bf16 %v269_v3, %v269_v3  ;;  %334 = vmatpush.bf16.msra.mxu0 %v469_v14  ;;  %s266_s5 = scalar_lea.vmem %s664_s4, %s453_s26 }
  0x18   : > { %v274_v5 = vunpack.c.l.b16 %v270_v2 }
  0x19   : > { %v275_v6 = vunpack.c.l.b16 %v271_v4 }
  0x1b   : > { %v276_v7 = vpack.c.b16 %v275_v6, %v274_v5 }
  0x1d   : > { %v278_v8 = vshrl.u32 %v276_v7, 16  ;;  %v280_v9 = vshll.u32 %v276_v7, 16  ;;  %v286_v12 = vrot.slane %v276_v7, 1 }
  0x1f   : > { %v282_v10 = vrot.slane %v280_v9, 1 }
  0x21   : > { %v283_v11 = vor.u32 %v282_v10, %v278_v8 }
  0x23   : > { %284 = vrot.lane.b32.xlu0 %v283_v11, %s556_s11 }
  0x2b   : > { %287 = vrot.lane.b32.xlu0 %v286_v12, %s557_s12 }
  0x95   : > { %v285_v15 = vpop.permute.xlu0 %284 }
  0x96   : > { %v292_v16 = vsel %vm289_vm0, %v270_v2, %v285_v15 }
  0x9d   : > { %v288_v17 = vpop.permute.xlu0 %287 }
  0x9e   : > { %v295_v18 = vsel %vm293_vm1, %v292_v16, %v288_v17 }
  0x9f   : > { %466 = vmatmul.msk.bf16.vlgmr.msra.gmra.mxu0 %vm324_vm2, %v295_v18 }
 0x11c   : > { %v336_v20 = vpop.f32.mrf.mxu0 }
 0x11d   : > { %v337_v21 = vadd.f32 %v515_v19, %v336_v20 }
 0x11f   : > { %340 = vst.msk [vmem:[%s266_s5] sm:$0xff] %vm293_vm1, %v337_v21 }
 0x124   : > { %v338_v22 = vpop.f32.mrf.mxu0 }
 0x125 PF: > { %s14_s19 = sadd.s32 1, %s554_s19   ;;  %s665_s15 = smov %s546_s17 }
 0x126   : > { %p11_p9 = scmp.ge.s32.totalorder %s14_s19, 6   ;;  %s666_s16 = smov %s550_s18 }
 0x127   : > { %s667_s17 = smov %s670_s20  ;;  %s668_s18 = smov %s674_s21 }
 0x128   :  { %13 = sbr.rel (!%p11_p9) target bundleno = 3 (0x3), region = 69 }

// kernel: generator_v2_forward.9
= control target key start
LH: loop header
LB: loop body
LE: loop exit
PB: predicated region body
PF: predicated region fallthrough
CT: control target
= control target key end

     0   :  { %s597_s15 = smov 0   ;;  %s599_s16 = smov 0   ;;  %s671_s0 = inlined_call_operand.vmem [shape: f32[2,24,32], index: 0, kind: input, shape index: {}, may-alias: {0,1}]   ;;  %s672_s1 = inlined_call_operand.vmem [shape: f32[2,24,32], index: 1, kind: input, shape index: {}, may-alias: {0,1}]   ;;  %s673_s2 = inlined_call_operand.vmem [shape: bf16[32,64], index: 2, kind: input, shape index: {}]   ;;  %s674_s3 = inlined_call_operand.vmem [shape: f32[1,32], index: 3, kind: input, shape index: {}]   ;;  %s675_s4 = inlined_call_operand.vmem [shape: f32[2,16,32], index: 4, kind: output, shape index: {}]  }
   0x1   :  { %s601_s17 = smov 0   ;;  %s603_s18 = smov 0  }
   0x2   :  { %s605_s19 = smov 0  }
   0x3 LB: > { %s23_s20 = sadd.s32 1, %s559_s17  ;;  %s26_s21 = sadd.s32 1, %s563_s18  ;;  %s567_s19 = sphi %s605_s19, %s14_s19   ;;  %s563_s18 = sphi %s603_s18, %s679_s18   ;;  %s559_s17 = sphi %s601_s17, %s678_s17   ;;  %s555_s16 = sphi %s599_s16, %s677_s16   ;;  %s551_s15 = sphi %s597_s15, %s676_s15  }
   0x4   : > { %p24_p0 = scmp.ge.s32.totalorder %s23_s20, 2  ;;  %p466_p1 = scmp.ge.s32.totalorder %s567_s19, 1 }
   0x5   : > { %p200_p2 = scmp.lt.s32.totalorder %s567_s19, 5 }
   0x6   : > { %s681_s20 = smov (%p24_p0, %s23_s20), 0  ;;  %s683_s21 = smov (!%p24_p0, %s26_s21), %s563_s18 }
   0x7   : > { %p201_p3 = pnand %p466_p1, %p200_p2  ;;  %p28_p4 = scmp.ge.s32.totalorder %s683_s21, 2 }
   0x8   : > { %p241_p5 = scmp.lt.s32.totalorder (!%p201_p3), %s555_s16, 1  ;;  %p243_p6 = scmp.lt.s32.totalorder (!%p201_p3), %s551_s15, 2 }
   0x9   : > { %s685_s21 = smov (%p28_p4, %s683_s21), 0  ;;  %204 = sbr.rel (%p201_p3) target bundleno = 400 (0x190), region = 36 }
   0xa   : > { %s249_s24 = sadd.s32 (!%p201_p3), 1, %s551_s15  ;;  %s569_s13 = smov (!%p201_p3), 96  }
   0xb   : > { %p252_p7 = scmp.lt.s32.totalorder (!%p201_p3), %s249_s24, 2  ;;  %s570_s14 = smov (!%p201_p3), 112  }
   0xc   : > { %s571_s22 = smov (!%p201_p3), 16   ;;  %p261_p8 = scmp.lt.s32.totalorder (!%p201_p3), %s551_s15, 1 }
   0xe   : > { %v483_v0 = vld [vmem:[%s673_s2 + $0x8] sm:$0xff]  ;;  %v482_v1 = vld [vmem:[%s673_s2] sm:$0xff]  ;;  %s687_s16 = smov (!%p241_p5, %s555_s16), 1  ;;  %s689_s24 = smov (!%p252_p7, %s249_s24), 2  ;;  %vm293_vm2 = vcmask 261120   ;;  %vm319_vm3 = vcmask 1040384  }
   0xf   : > { %303 = vmatpush.bf16.msra.mxu0 %v483_v0  ;;  %s244_s27 = scalar_select %p243_p6, %s551_s15, 2  ;;  %vm335_vm4 = vcmask 1046528   ;;  %vm345_vm5 = vcmask 130048   ;;  %v528_v23 = vld [vmem:[%s674_s3] ss:$0 sm:$0xff]  ;;  %vm354_vm6 = vcmask 261121  }
  0x10   : > { %s484_s28 = smul.u32 3, %s687_s16  ;;  %s691_s15 = smov (!%p261_p8, %s551_s15), 1  ;;  %vm356_vm7 = vcmask 253952  }
  0x11   : > { %s469_s23 = sshll.u32 %s687_s16, 1 }
  0x12   : > { %s246_s29 = sadd.s32 %s484_s28, %s244_s27  ;;  %s255_s8 = sadd.s32 %s484_s28, %s689_s24 }
  0x13   : > { %304 = vmatpush.bf16.msra.mxu0 %v482_v1  ;;  %s467_s30 = sshll.u32 %s246_s29, 3  ;;  %s468_s9 = sshll.u32 %s255_s8, 3 }
  0x14   : > { %s248_s7 = scalar_lea.vmem %s671_s0, %s467_s30  ;;  %s257_s12 = scalar_lea.vmem %s672_s1, %s468_s9 }
  0x15   : > { %v268_v2 = vld [vmem:[%s248_s7] sm:$0xff]  ;;  %s264_s24 = sadd.s32 %s469_s23, %s691_s15 }
  0x16   : > { %v272_v3 = vmul.f32 0.2, %v268_v2  ;;  %vm270_vm0 = vcmp.gt.f32.partialorder %v268_v2, 0.0  ;;  %v269_v4 = vld [vmem:[%s257_s12] sm:$0xff]  ;;  %s470_s25 = sshll.u32 %s264_s24, 3 }
  0x17   : > { %vm271_vm1 = vcmp.gt.f32.partialorder %v269_v4, 0.0  ;;  %v273_v5 = vmul.f32 0.2, %v269_v4  ;;  %s266_s30 = scalar_lea.vmem %s675_s4, %s470_s25 }
  0x18   : > { %v274_v6 = vsel %vm270_vm0, %v268_v2, %v272_v3 }
  0x19   : > { %v275_v7 = vsel %vm271_vm1, %v269_v4, %v273_v5 }
  0x1a   : > { %v276_v8 = vpack.c.bf16 %v275_v7, %v274_v6 }
  0x1c   : > { %479 = vmatmul.msk.bf16.vlgmr.msra.gmra.mxu0 %vm293_vm2, %v276_v8 }
  0x99   : > { %v306_v9 = vpop.f32.mrf.mxu0 }
  0x9a   : > { %v312_v10 = vrot.slane %v306_v9, 7 }
  0x9c   : > { %313 = vrot.lane.b32.xlu0 %v312_v10, %s569_s13 }
  0xa1   : > { %v308_v11 = vpop.f32.mrf.mxu0 }
  0xa2   : > { %v320_v12 = vrot.slane %v308_v11, 7 }
  0xa4   : > { %v321_v13 = vsel %vm319_vm3, %v312_v10, %v320_v12 }
  0xa5   : > { %322 = vrot.lane.b32.xlu0 %v321_v13, %s569_s13 }
 0x10e   : > { %v314_v14 = vpop.permute.xlu0 %313 }
 0x10f   : > { %v316_v15 = vadd.f32 %v314_v14, %v306_v9  ;;  %v317_v16 = vadd.f32 %v314_v14, %v308_v11 }
 0x111   : > { %328 = vrot.lane.b32.xlu1 %v316_v15, %s570_s14  ;;  %v336_v19 = vrot.slane %v316_v15, 1 }
 0x117   : > { %v323_v17 = vpop.permute.xlu0 %322 }
 0x118   : > { %v325_v18 = vadd.f32 %v323_v17, %v308_v11 }
 0x119   : > { %330 = vrot.lane.b32.xlu1 %v317_v16, %s570_s14 }
 0x11a   : > { %v337_v20 = vrot.slane %v325_v18, 1 }
 0x11c   : > { %v338_v21 = vsel %vm335_vm4, %v336_v19, %v337_v20 }
 0x11d   : > { %339 = vrot.lane.b32.xlu2 %v338_v21, %s571_s22 }
 0x125   : > { %341 = vrot.lane.b32.xlu2 %v337_v20, %s571_s22 }
 0x177   : > { %v340_v22 = vpop.permute.xlu2 %339 }
 0x17f   : > { %v342_v27 = vpop.permute.xlu2 %341 }
 0x183   : > { %v329_v24 = vpop.permute.xlu1 %328 }
 0x184   : > { %v346_v25 = vsel %vm345_vm5, %v329_v24, %v340_v22 }
 0x185   : > { %v352_v26 = vadd.f32 %v528_v23, %v346_v25 }
 0x187   : > { %355 = vst.msk [vmem:[%s266_s30 - $0x1] sm:$0xfe] %vm354_vm6, %v352_v26 }
 0x18b   : > { %v331_v28 = vpop.permute.xlu1 %330 }
 0x18c   : > { %v347_v29 = vsel %vm345_vm5, %v331_v28, %v342_v27 }
 0x18d   : > { %v353_v30 = vadd.f32 %v528_v23, %v347_v29 }
 0x18f   : > { %357 = vst.msk [vmem:[%s266_s30 + $0x7] sm:$0x1] %vm356_vm7, %v353_v30 }
 0x190 PF: > { %s14_s19 = sadd.s32 1, %s567_s19   ;;  %s676_s15 = smov %s559_s17 }
 0x191   : > { %p11_p9 = scmp.ge.s32.totalorder %s14_s19, 6   ;;  %s677_s16 = smov %s563_s18 }
 0x192   : > { %s678_s17 = smov %s681_s20  ;;  %s679_s18 = smov %s685_s21 }
 0x193   :  { %13 = sbr.rel (!%p11_p9) target bundleno = 3 (0x3), region = 69 }

// kernel: generator_v2_forward.10
= control target key start
LH: loop header
LB: loop body
LE: loop exit
PB: predicated region body
PF: predicated region fallthrough
CT: control target
= control target key end

     0   :  { %s700_s21 = smov 0   ;;  %s702_s22 = smov 0   ;;  %s785_s0 = inlined_call_operand.vmem [shape: f32[2,40,16], index: 0, kind: input, shape index: {}, may-alias: {0,1}]   ;;  %s786_s1 = inlined_call_operand.vmem [shape: f32[2,40,16], index: 1, kind: input, shape index: {}, may-alias: {0,1}]   ;;  %s787_s2 = inlined_call_operand.vmem [shape: bf16[48,16], index: 2, kind: input, shape index: {}]   ;;  %s788_s3 = inlined_call_operand.vmem [shape: f32[1,16], index: 3, kind: input, shape index: {}]   ;;  %s789_s4 = inlined_call_operand.vmem [shape: bf16[16,16], index: 4, kind: input, shape index: {}]   ;;  %s790_s5 = inlined_call_operand.vmem [shape: f32[1,16], index: 5, kind: input, shape index: {}]   ;;  %s791_s6 = inlined_call_operand.vmem [shape: f32[2,32,16], index: 6, kind: output, shape index: {}]  }
   0x1   :  { %s704_s23 = smov 0   ;;  %s706_s24 = smov 0  }
   0x2   :  { %s708_s25 = smov 0  }
   0x3 LB: > { %s25_s26 = sadd.s32 1, %s653_s23  ;;  %s28_s27 = sadd.s32 1, %s657_s24  ;;  %s661_s25 = sphi %s708_s25, %s16_s25   ;;  %s657_s24 = sphi %s706_s24, %s795_s24   ;;  %s653_s23 = sphi %s704_s23, %s794_s23   ;;  %s649_s22 = sphi %s702_s22, %s793_s22   ;;  %s645_s21 = sphi %s700_s21, %s792_s21  }
   0x4   : > { %p26_p0 = scmp.ge.s32.totalorder %s25_s26, 4  ;;  %p549_p1 = scmp.ge.s32.totalorder %s661_s25, 1 }
   0x5   : > { %p250_p2 = scmp.lt.s32.totalorder %s661_s25, 9 }
   0x6   : > { %s797_s26 = smov (%p26_p0, %s25_s26), 0  ;;  %s799_s27 = smov (!%p26_p0, %s28_s27), %s657_s24 }
   0x7   : > { %p251_p3 = pnand %p549_p1, %p250_p2  ;;  %p30_p4 = scmp.ge.s32.totalorder %s799_s27, 2 }
   0x8   : > { %p295_p5 = scmp.lt.s32.totalorder (!%p251_p3), %s649_s22, 1  ;;  %p297_p6 = scmp.lt.s32.totalorder (!%p251_p3), %s645_s21, 4 }
   0x9   : > { %s801_s27 = smov (%p30_p4, %s799_s27), 0  ;;  %254 = sbr.rel (%p251_p3) target bundleno = 429 (0x1ad), region = 44 }
   0xa   : > { %s303_s28 = sadd.s32 (!%p251_p3), 1, %s645_s21  ;;  %s663_s19 = smov (!%p251_p3), 16  }
   0xb   : > { %p306_p7 = scmp.lt.s32.totalorder (!%p251_p3), %s303_s28, 4  ;;  %s664_s20 = smov (!%p251_p3), 32  }
   0xc   : > { %p315_p8 = scmp.lt.s32.totalorder (!%p251_p3), %s645_s21, 3 }
   0xe   : > { %s803_s22 = smov (!%p295_p5, %s649_s22), 1  ;;  %v576_v0 = vld [vmem:[%s787_s2 + $0x10] sm:$0xff]  ;;  %s805_s28 = smov (!%p306_p7, %s303_s28), 4  ;;  %v575_v17 = vld [vmem:[%s787_s2 + $0x8] sm:$0xff]  ;;  %v574_v18 = vld [vmem:[%s787_s2] sm:$0xff]  ;;  %vm349_vm2 = vcmask 130048  }
   0xf   : > { %s298_s29 = scalar_select %p297_p6, %s645_s21, 4  ;;  %392 = vmatpush.bf16.msra.mxu0 %v576_v0  ;;  %vm353_vm3 = vcmask 261120   ;;  %vm384_vm4 = vcmask 392192   ;;  %v577_v23 = vld [vmem:[%s789_s4] sm:$0xff]  ;;  %vm437_vm6 = vcmask 130049   ;;  %vm439_vm7 = vcmask 122880  }
  0x10   : > { %s578_s30 = smul.u32 5, %s803_s22  ;;  %426 = vmatpush.bf16.msra.mxu1 %v577_v23  ;;  %v621_v24 = vld [vmem:[%s788_s3] ss:$0 sm:$0xff]  ;;  %s807_s21 = smov (!%p315_p8, %s645_s21), 3 }
  0x11   : > { %s552_s12 = sshll.u32 %s803_s22, 2  ;;  %v622_v31 = vld [vmem:[%s790_s5] ss:$0 sm:$0xff] }
  0x12   : > { %s300_s7 = sadd.s32 %s578_s30, %s298_s29  ;;  %s309_s14 = sadd.s32 %s578_s30, %s805_s28 }
  0x13   : > { %s550_s10 = sshll.u32 %s300_s7, 3  ;;  %s551_s15 = sshll.u32 %s309_s14, 3  ;;  %393 = vmatpush.bf16.msra.mxu0 %v575_v17 }
  0x14   : > { %s302_s13 = scalar_lea.vmem %s785_s0, %s550_s10  ;;  %s311_s18 = scalar_lea.vmem %s786_s1, %s551_s15 }
  0x15   : > { %v322_v1 = vld [vmem:[%s302_s13] sm:$0xff]  ;;  %s318_s15 = sadd.s32 %s552_s12, %s807_s21 }
  0x16   : > { %vm324_vm0 = vcmp.gt.f32.partialorder %v322_v1, 0.0  ;;  %v326_v2 = vmul.f32 0.2, %v322_v1  ;;  %v323_v4 = vld [vmem:[%s311_s18] sm:$0xff]  ;;  %s553_s16 = sshll.u32 %s318_s15, 3 }
  0x17   : > { %vm325_vm1 = vcmp.gt.f32.partialorder %v323_v4, 0.0  ;;  %v327_v6 = vmul.f32 0.2, %v323_v4  ;;  %394 = vmatpush.bf16.msra.mxu0 %v574_v18 }
  0x18   : > { %v328_v3 = vsel %vm324_vm0, %v322_v1, %v326_v2 }
  0x19   : > { %v330_v5 = vpack.c.bf16 %v328_v3, %v328_v3  ;;  %v329_v7 = vsel %vm325_vm1, %v323_v4, %v327_v6 }
  0x1a   : > { %v331_v8 = vpack.c.bf16 %v329_v7, %v329_v7 }
  0x1b   : > { %v334_v9 = vunpack.c.l.b16 %v330_v5 }
  0x1c   : > { %v335_v10 = vunpack.c.l.b16 %v331_v8 }
  0x1e   : > { %v336_v11 = vpack.c.b16 %v335_v10, %v334_v9 }
  0x20   : > { %v338_v12 = vshrl.u32 %v336_v11, 16  ;;  %v340_v13 = vshll.u32 %v336_v11, 16  ;;  %v346_v16 = vrot.slane %v336_v11, 1 }
  0x22   : > { %v342_v14 = vrot.slane %v340_v13, 1 }
  0x24   : > { %v343_v15 = vor.u32 %v342_v14, %v338_v12 }
  0x26   : > { %344 = vrot.lane.b32.xlu0 %v343_v15, %s663_s19  ;;  %s320_s19 = scalar_lea.vmem %s791_s6, %s553_s16 }
  0x2e   : > { %347 = vrot.lane.b32.xlu0 %v346_v16, %s664_s20 }
  0x98   : > { %v345_v19 = vpop.permute.xlu0 %344 }
  0x99   : > { %v352_v20 = vsel %vm349_vm2, %v330_v5, %v345_v19 }
  0xa0   : > { %v348_v21 = vpop.permute.xlu0 %347 }
  0xa1   : > { %v355_v22 = vsel %vm353_vm3, %v352_v20, %v348_v21 }
  0xa2   : > { %566 = vmatmul.msk.bf16.vlgmr.msra.gmra.mxu0 %vm384_vm4, %v355_v22 }
 0x11f   : > { %v396_v25 = vpop.f32.mrf.mxu0 }
 0x120   : > { %v397_v26 = vadd.f32 %v621_v24, %v396_v25 }
 0x122   : > { %vm400_vm5 = vcmp.gt.f32.partialorder %v397_v26, 0.0  ;;  %v401_v27 = vmul.f32 0.2, %v397_v26 }
 0x124   : > { %v402_v28 = vsel %vm400_vm5, %v397_v26, %v401_v27 }
 0x125   : > { %v403_v29 = vpack.c.bf16 %v402_v28, %v402_v28 }
 0x127   : > { %v398_v30 = vpop.f32.mrf.mxu0  ;;  %571 = vmatmul.msk.bf16.vlgmr.msra.gmra.mxu1 %vm349_vm2, %v403_v29 }
 0x1a4   : > { %v428_v32 = vpop.f32.mrf.mxu1 }
 0x1a5   : > { %v429_v33 = vadd.f32 %v622_v31, %v428_v32 }
 0x1a7   : > { %v433_v34 = vrot.slane %v429_v33, 7 }
 0x1a9   : > { %v435_v35 = vadd.f32 %v433_v34, %v322_v1  ;;  %v436_v36 = vadd.f32 %v433_v34, %v323_v4 }
 0x1ab   : > { %438 = vst.msk [vmem:[%s320_s19 - $0x1] sm:$0xfe] %vm437_vm6, %v435_v35 }
 0x1ac   : > { %440 = vst.msk [vmem:[%s320_s19 + $0x7] sm:$0x1] %vm439_vm7, %v436_v36  ;;  %v430_v37 = vpop.f32.mrf.mxu1 }
 0x1ad PF: > { %s16_s25 = sadd.s32 1, %s661_s25   ;;  %s792_s21 = smov %s653_s23 }
 0x1ae   : > { %p13_p9 = scmp.ge.s32.totalorder %s16_s25, 10   ;;  %s793_s22 = smov %s657_s24 }
 0x1af   : > { %s794_s23 = smov %s797_s26  ;;  %s795_s24 = smov %s801_s27 }
 0x1b0   :  { %15 = sbr.rel (!%p13_p9) target bundleno = 3 (0x3), region = 77 }

// kernel: tile.18
= control target key start
LH: loop header
LB: loop body
LE: loop exit
PB: predicated region body
PF: predicated region fallthrough
CT: control target
= control target key end

     0   :  { %s22_s0 = inlined_call_operand.vmem [shape: f32[8], index: 0, kind: input, shape index: {}]   ;;  %s23_s1 = inlined_call_operand.vmem [shape: f32[2,8], index: 1, kind: output, shape index: {}]  }
   0x1   :  { %v4_v0 = vld [vmem:[%s22_s0] ss:$0 sm:$0xff] }
   0x2   :  { %5 = vst [vmem:[%s23_s1] sm:$0x3] %v4_v0 }

// kernel: tile.19
= control target key start
LH: loop header
LB: loop body
LE: loop exit
PB: predicated region body
PF: predicated region fallthrough
CT: control target
= control target key end

     0   :  { %vm7_vm0 = vcmask 64512   ;;  %vm13_vm1 = vcmask 130112   ;;  %s39_s0 = inlined_call_operand.vmem [shape: f32[2,8], index: 0, kind: input, shape index: {}]   ;;  %s40_s1 = inlined_call_operand.vmem [shape: f32[1,16], index: 1, kind: output, shape index: {}]  }
   0x1   :  { %v4_v0 = vld [vmem:[%s39_s0] sm:$0x3]  ;;  %s22_s0 = smov 8  }
   0x2   :  { %5 = vst [vmem:[#allocation1] sm:$0x3] %v4_v0 }
   0x9   :  { %v10_v1 = vld [vmem:[#allocation1 + $0x1] sm:$0x1]   ;;  %v6_v2 = vld [vmem:[#allocation1] sm:$0x1]  }
   0xa   :  { %11 = vrot.lane.b32.xlu0 %v10_v1, %s22_s0  ;;  %8 = vst.msk [vmem:[#allocation0] sm:$0x1] %vm7_vm0, %v6_v2  }
  0x7c   :  { %v12_v3 = vpop.permute.xlu0 %11  }
  0x7d   :  { %14 = vst.msk [vmem:[#allocation0] sm:$0x1] %vm13_vm1, %v12_v3  }
  0x84   :  { %v17_v4 = vld [vmem:[#allocation0] sm:$0x1] }
  0x85   :  { %20 = vst [vmem:[%s40_s1] sm:$0x1] %v17_v4 }

// kernel: generator_v2_forward.11
= control target key start
LH: loop header
LB: loop body
LE: loop exit
PB: predicated region body
PF: predicated region fallthrough
CT: control target
= control target key end

     0   :  { %s701_s21 = smov 0   ;;  %s703_s22 = smov 0   ;;  %s786_s0 = inlined_call_operand.vmem [shape: f32[2,40,16], index: 0, kind: input, shape index: {}, may-alias: {0,1}]   ;;  %s787_s1 = inlined_call_operand.vmem [shape: f32[2,40,16], index: 1, kind: input, shape index: {}, may-alias: {0,1}]   ;;  %s788_s2 = inlined_call_operand.vmem [shape: bf16[48,16], index: 2, kind: input, shape index: {}]   ;;  %s789_s3 = inlined_call_operand.vmem [shape: f32[1,16], index: 3, kind: input, shape index: {}]   ;;  %s790_s4 = inlined_call_operand.vmem [shape: bf16[16,16], index: 4, kind: input, shape index: {}]   ;;  %s791_s5 = inlined_call_operand.vmem [shape: f32[1,16], index: 5, kind: input, shape index: {}]   ;;  %s792_s6 = inlined_call_operand.vmem [shape: f32[2,32,16], index: 6, kind: output, shape index: {}]  }
   0x1   :  { %s705_s23 = smov 0   ;;  %s707_s24 = smov 0  }
   0x2   :  { %s709_s25 = smov 0  }
   0x3 LB: > { %s25_s26 = sadd.s32 1, %s654_s23  ;;  %s28_s27 = sadd.s32 1, %s658_s24  ;;  %s662_s25 = sphi %s709_s25, %s16_s25   ;;  %s658_s24 = sphi %s707_s24, %s796_s24   ;;  %s654_s23 = sphi %s705_s23, %s795_s23   ;;  %s650_s22 = sphi %s703_s22, %s794_s22   ;;  %s646_s21 = sphi %s701_s21, %s793_s21  }
   0x4   : > { %p26_p0 = scmp.ge.s32.totalorder %s25_s26, 4  ;;  %p550_p1 = scmp.ge.s32.totalorder %s662_s25, 1 }
   0x5   : > { %p250_p2 = scmp.lt.s32.totalorder %s662_s25, 9 }
   0x6   : > { %s798_s26 = smov (%p26_p0, %s25_s26), 0  ;;  %s800_s27 = smov (!%p26_p0, %s28_s27), %s658_s24 }
   0x7   : > { %p251_p3 = pnand %p550_p1, %p250_p2  ;;  %p30_p4 = scmp.ge.s32.totalorder %s800_s27, 2 }
   0x8   : > { %p295_p5 = scmp.lt.s32.totalorder (!%p251_p3), %s650_s22, 1  ;;  %p297_p6 = scmp.lt.s32.totalorder (!%p251_p3), %s646_s21, 4 }
   0x9   : > { %s802_s27 = smov (%p30_p4, %s800_s27), 0  ;;  %254 = sbr.rel (%p251_p3) target bundleno = 429 (0x1ad), region = 44 }
   0xa   : > { %s303_s28 = sadd.s32 (!%p251_p3), 1, %s646_s21  ;;  %s664_s19 = smov (!%p251_p3), 16  }
   0xb   : > { %p306_p7 = scmp.lt.s32.totalorder (!%p251_p3), %s303_s28, 4  ;;  %s665_s20 = smov (!%p251_p3), 32  }
   0xc   : > { %p315_p8 = scmp.lt.s32.totalorder (!%p251_p3), %s646_s21, 3 }
   0xe   : > { %s804_s22 = smov (!%p295_p5, %s650_s22), 1  ;;  %v577_v0 = vld [vmem:[%s788_s2 + $0x10] sm:$0xff]  ;;  %s806_s28 = smov (!%p306_p7, %s303_s28), 4  ;;  %v576_v18 = vld [vmem:[%s788_s2 + $0x8] sm:$0xff]  ;;  %v575_v19 = vld [vmem:[%s788_s2] sm:$0xff]  ;;  %vm350_vm2 = vcmask 130048  }
   0xf   : > { %s298_s29 = scalar_select %p297_p6, %s646_s21, 4  ;;  %393 = vmatpush.bf16.msra.mxu0 %v577_v0  ;;  %vm354_vm3 = vcmask 261120   ;;  %vm385_vm4 = vcmask 392192   ;;  %v578_v24 = vld [vmem:[%s790_s4] sm:$0xff]  ;;  %vm438_vm6 = vcmask 130051   ;;  %vm440_vm7 = vcmask 124928  }
  0x10   : > { %s579_s30 = smul.u32 5, %s804_s22  ;;  %427 = vmatpush.bf16.msra.mxu1 %v578_v24  ;;  %v622_v25 = vld [vmem:[%s789_s3] ss:$0 sm:$0xff]  ;;  %s808_s21 = smov (!%p315_p8, %s646_s21), 3 }
  0x11   : > { %s553_s12 = sshll.u32 %s804_s22, 2  ;;  %v623_v32 = vld [vmem:[%s791_s5] ss:$0 sm:$0xff] }
  0x12   : > { %s300_s7 = sadd.s32 %s579_s30, %s298_s29  ;;  %s309_s14 = sadd.s32 %s579_s30, %s806_s28 }
  0x13   : > { %s551_s10 = sshll.u32 %s300_s7, 3  ;;  %s552_s15 = sshll.u32 %s309_s14, 3  ;;  %394 = vmatpush.bf16.msra.mxu0 %v576_v18 }
  0x14   : > { %s302_s13 = scalar_lea.vmem %s786_s0, %s551_s10  ;;  %s311_s18 = scalar_lea.vmem %s787_s1, %s552_s15 }
  0x15   : > { %v322_v1 = vld [vmem:[%s302_s13] sm:$0xff]  ;;  %s318_s15 = sadd.s32 %s553_s12, %s808_s21 }
  0x16   : > { %vm324_vm0 = vcmp.gt.f32.partialorder %v322_v1, 0.0  ;;  %v326_v2 = vmul.f32 0.2, %v322_v1  ;;  %v323_v4 = vld [vmem:[%s311_s18] sm:$0xff]  ;;  %s554_s16 = sshll.u32 %s318_s15, 3 }
  0x17   : > { %vm325_vm1 = vcmp.gt.f32.partialorder %v323_v4, 0.0  ;;  %v327_v6 = vmul.f32 0.2, %v323_v4  ;;  %395 = vmatpush.bf16.msra.mxu0 %v575_v19 }
  0x18   : > { %v328_v3 = vsel %vm324_vm0, %v322_v1, %v326_v2 }
  0x19   : > { %v330_v5 = vpack.c.bf16 %v328_v3, %v328_v3  ;;  %v329_v7 = vsel %vm325_vm1, %v323_v4, %v327_v6 }
  0x1a   : > { %v331_v8 = vpack.c.bf16 %v329_v7, %v329_v7 }
  0x1b   : > { %v334_v9 = vunpack.c.l.b16 %v330_v5 }
  0x1c   : > { %v335_v10 = vunpack.c.l.b16 %v331_v8 }
  0x1e   : > { %v336_v11 = vpack.c.b16 %v335_v10, %v334_v9 }
  0x20   : > { %v338_v12 = vshrl.u32 %v336_v11, 16  ;;  %v341_v13 = vshll.u32 %v336_v11, 16  ;;  %v347_v17 = vrot.slane %v336_v11, 3 }
  0x22   : > { %v340_v14 = vrot.slane %v338_v12, 1  ;;  %v343_v15 = vrot.slane %v341_v13, 2 }
  0x24   : > { %v344_v16 = vor.u32 %v343_v15, %v340_v14 }
  0x26   : > { %345 = vrot.lane.b32.xlu0 %v344_v16, %s664_s19  ;;  %s320_s19 = scalar_lea.vmem %s792_s6, %s554_s16 }
  0x2e   : > { %348 = vrot.lane.b32.xlu0 %v347_v17, %s665_s20 }
  0x98   : > { %v346_v20 = vpop.permute.xlu0 %345 }
  0x99   : > { %v353_v21 = vsel %vm350_vm2, %v330_v5, %v346_v20 }
  0xa0   : > { %v349_v22 = vpop.permute.xlu0 %348 }
  0xa1   : > { %v356_v23 = vsel %vm354_vm3, %v353_v21, %v349_v22 }
  0xa2   : > { %567 = vmatmul.msk.bf16.vlgmr.msra.gmra.mxu0 %vm385_vm4, %v356_v23 }
 0x11f   : > { %v397_v26 = vpop.f32.mrf.mxu0 }
 0x120   : > { %v398_v27 = vadd.f32 %v622_v25, %v397_v26 }
 0x122   : > { %vm401_vm5 = vcmp.gt.f32.partialorder %v398_v27, 0.0  ;;  %v402_v28 = vmul.f32 0.2, %v398_v27 }
 0x124   : > { %v403_v29 = vsel %vm401_vm5, %v398_v27, %v402_v28 }
 0x125   : > { %v404_v30 = vpack.c.bf16 %v403_v29, %v403_v29 }
 0x127   : > { %v399_v31 = vpop.f32.mrf.mxu0  ;;  %572 = vmatmul.msk.bf16.vlgmr.msra.gmra.mxu1 %vm350_vm2, %v404_v30 }
 0x1a4   : > { %v429_v33 = vpop.f32.mrf.mxu1 }
 0x1a5   : > { %v430_v34 = vadd.f32 %v623_v32, %v429_v33 }
 0x1a7   : > { %v434_v35 = vrot.slane %v430_v34, 5 }
 0x1a9   : > { %v436_v36 = vadd.f32 %v434_v35, %v322_v1  ;;  %v437_v37 = vadd.f32 %v434_v35, %v323_v4 }
 0x1ab   : > { %439 = vst.msk [vmem:[%s320_s19 - $0x3] sm:$0xf8] %vm438_vm6, %v436_v36 }
 0x1ac   : > { %441 = vst.msk [vmem:[%s320_s19 + $0x5] sm:$0x7] %vm440_vm7, %v437_v37  ;;  %v431_v38 = vpop.f32.mrf.mxu1 }
 0x1ad PF: > { %s16_s25 = sadd.s32 1, %s662_s25   ;;  %s793_s21 = smov %s654_s23 }
 0x1ae   : > { %p13_p9 = scmp.ge.s32.totalorder %s16_s25, 10   ;;  %s794_s22 = smov %s658_s24 }
 0x1af   : > { %s795_s23 = smov %s798_s26  ;;  %s796_s24 = smov %s802_s27 }
 0x1b0   :  { %15 = sbr.rel (!%p13_p9) target bundleno = 3 (0x3), region = 77 }

// kernel: generator_v2_forward.12
= control target key start
LH: loop header
LB: loop body
LE: loop exit
PB: predicated region body
PF: predicated region fallthrough
CT: control target
= control target key end

     0   :  { %s584_s15 = smov 0   ;;  %s586_s16 = smov 0   ;;  %s655_s0 = inlined_call_operand.vmem [shape: f32[2,40,16], index: 0, kind: input, shape index: {}, may-alias: {0,1}]   ;;  %s656_s1 = inlined_call_operand.vmem [shape: f32[2,40,16], index: 1, kind: input, shape index: {}, may-alias: {0,1}]   ;;  %s657_s2 = inlined_call_operand.vmem [shape: bf16[16,32], index: 2, kind: input, shape index: {}]   ;;  %s658_s3 = inlined_call_operand.vmem [shape: f32[1,16], index: 3, kind: input, shape index: {}]   ;;  %s659_s4 = inlined_call_operand.vmem [shape: f32[2,32,16], index: 4, kind: output, shape index: {}]  }
   0x1   :  { %s588_s17 = smov 0   ;;  %s590_s18 = smov 0  }
   0x2   :  { %s592_s19 = smov 0  }
   0x3 LB: > { %s23_s20 = sadd.s32 1, %s546_s17  ;;  %s26_s21 = sadd.s32 1, %s550_s18  ;;  %s554_s19 = sphi %s592_s19, %s14_s19   ;;  %s550_s18 = sphi %s590_s18, %s663_s18   ;;  %s546_s17 = sphi %s588_s17, %s662_s17   ;;  %s542_s16 = sphi %s586_s16, %s661_s16   ;;  %s538_s15 = sphi %s584_s15, %s660_s15  }
   0x4   : > { %p24_p0 = scmp.ge.s32.totalorder %s23_s20, 4  ;;  %p458_p1 = scmp.ge.s32.totalorder %s554_s19, 1 }
   0x5   : > { %p200_p2 = scmp.lt.s32.totalorder %s554_s19, 9 }
   0x6   : > { %s665_s20 = smov (%p24_p0, %s23_s20), 0  ;;  %s667_s21 = smov (!%p24_p0, %s26_s21), %s550_s18 }
   0x7   : > { %p201_p3 = pnand %p458_p1, %p200_p2  ;;  %p28_p4 = scmp.ge.s32.totalorder %s667_s21, 2 }
   0x8   : > { %p241_p5 = scmp.lt.s32.totalorder (!%p201_p3), %s542_s16, 1  ;;  %p243_p6 = scmp.lt.s32.totalorder (!%p201_p3), %s538_s15, 4 }
   0x9   : > { %s669_s21 = smov (%p28_p4, %s667_s21), 0  ;;  %204 = sbr.rel (%p201_p3) target bundleno = 400 (0x190), region = 36 }
   0xa   : > { %s249_s24 = sadd.s32 (!%p201_p3), 1, %s538_s15  ;;  %s556_s11 = smov (!%p201_p3), 112  }
   0xb   : > { %p252_p7 = scmp.lt.s32.totalorder (!%p201_p3), %s249_s24, 4  ;;  %s557_s12 = smov (!%p201_p3), 120  }
   0xc   : > { %s558_s13 = smov (!%p201_p3), 8   ;;  %p261_p8 = scmp.lt.s32.totalorder (!%p201_p3), %s538_s15, 3 }
   0xe   : > { %v470_v0 = vld [vmem:[%s657_s2] sm:$0xff]  ;;  %s671_s16 = smov (!%p241_p5, %s542_s16), 1  ;;  %s673_s24 = smov (!%p252_p7, %s249_s24), 4  ;;  %vm285_vm2 = vcmask 130048   ;;  %vm311_vm3 = vcmask 1040384   ;;  %vm327_vm4 = vcmask 1046528  }
   0xf   : > { %296 = vmatpush.bf16.msra.mxu0 %v470_v0  ;;  %s244_s25 = scalar_select %p243_p6, %s538_s15, 4  ;;  %vm337_vm5 = vcmask 64512   ;;  %v515_v22 = vld [vmem:[%s658_s3] ss:$0 sm:$0xff]  ;;  %vm346_vm6 = vcmask 130049   ;;  %vm348_vm7 = vcmask 122880  }
  0x10   : > { %s471_s26 = smul.u32 5, %s671_s16  ;;  %s675_s15 = smov (!%p261_p8, %s538_s15), 3 }
  0x11   : > { %s461_s14 = sshll.u32 %s671_s16, 2 }
  0x12   : > { %s246_s27 = sadd.s32 %s471_s26, %s244_s25  ;;  %s255_s6 = sadd.s32 %s471_s26, %s673_s24 }
  0x13   : > { %s459_s28 = sshll.u32 %s246_s27, 3  ;;  %s460_s7 = sshll.u32 %s255_s6, 3 }
  0x14   : > { %s248_s5 = scalar_lea.vmem %s655_s0, %s459_s28  ;;  %s257_s10 = scalar_lea.vmem %s656_s1, %s460_s7 }
  0x15   : > { %v268_v1 = vld [vmem:[%s248_s5] sm:$0xff]  ;;  %s264_s22 = sadd.s32 %s461_s14, %s675_s15 }
  0x16   : > { %v272_v2 = vmul.f32 0.2, %v268_v1  ;;  %vm270_vm0 = vcmp.gt.f32.partialorder %v268_v1, 0.0  ;;  %v269_v3 = vld [vmem:[%s257_s10] sm:$0xff]  ;;  %s462_s23 = sshll.u32 %s264_s22, 3 }
  0x17   : > { %vm271_vm1 = vcmp.gt.f32.partialorder %v269_v3, 0.0  ;;  %v273_v4 = vmul.f32 0.2, %v269_v3  ;;  %s266_s28 = scalar_lea.vmem %s659_s4, %s462_s23 }
  0x18   : > { %v274_v5 = vsel %vm270_vm0, %v268_v1, %v272_v2 }
  0x19   : > { %v275_v6 = vsel %vm271_vm1, %v269_v3, %v273_v4 }
  0x1a   : > { %v276_v7 = vpack.c.bf16 %v275_v6, %v274_v5 }
  0x1c   : > { %467 = vmatmul.msk.bf16.vlgmr.msra.gmra.mxu0 %vm285_vm2, %v276_v7 }
  0x99   : > { %v298_v8 = vpop.f32.mrf.mxu0 }
  0x9a   : > { %v304_v9 = vrot.slane %v298_v8, 7 }
  0x9c   : > { %305 = vrot.lane.b32.xlu0 %v304_v9, %s556_s11 }
  0xa1   : > { %v300_v10 = vpop.f32.mrf.mxu0 }
  0xa2   : > { %v312_v11 = vrot.slane %v300_v10, 7 }
  0xa4   : > { %v313_v12 = vsel %vm311_vm3, %v304_v9, %v312_v11 }
  0xa5   : > { %314 = vrot.lane.b32.xlu0 %v313_v12, %s556_s11 }
 0x10e   : > { %v306_v13 = vpop.permute.xlu0 %305 }
 0x10f   : > { %v308_v14 = vadd.f32 %v306_v13, %v298_v8  ;;  %v309_v15 = vadd.f32 %v306_v13, %v300_v10 }
 0x111   : > { %320 = vrot.lane.b32.xlu1 %v308_v14, %s557_s12  ;;  %v328_v18 = vrot.slane %v308_v14, 1 }
 0x117   : > { %v315_v16 = vpop.permute.xlu0 %314 }
 0x118   : > { %v317_v17 = vadd.f32 %v315_v16, %v300_v10 }
 0x119   : > { %322 = vrot.lane.b32.xlu1 %v309_v15, %s557_s12 }
 0x11a   : > { %v329_v19 = vrot.slane %v317_v17, 1 }
 0x11c   : > { %v330_v20 = vsel %vm327_vm4, %v328_v18, %v329_v19 }
 0x11d   : > { %331 = vrot.lane.b32.xlu2 %v330_v20, %s558_s13 }
 0x125   : > { %333 = vrot.lane.b32.xlu2 %v329_v19, %s558_s13 }
 0x177   : > { %v332_v21 = vpop.permute.xlu2 %331 }
 0x17f   : > { %v334_v26 = vpop.permute.xlu2 %333 }
 0x183   : > { %v321_v23 = vpop.permute.xlu1 %320 }
 0x184   : > { %v338_v24 = vsel %vm337_vm5, %v321_v23, %v332_v21 }
 0x185   : > { %v344_v25 = vadd.f32 %v515_v22, %v338_v24 }
 0x187   : > { %347 = vst.msk [vmem:[%s266_s28 - $0x1] sm:$0xfe] %vm346_vm6, %v344_v25 }
 0x18b   : > { %v323_v27 = vpop.permute.xlu1 %322 }
 0x18c   : > { %v339_v28 = vsel %vm337_vm5, %v323_v27, %v334_v26 }
 0x18d   : > { %v345_v29 = vadd.f32 %v515_v22, %v339_v28 }
 0x18f   : > { %349 = vst.msk [vmem:[%s266_s28 + $0x7] sm:$0x1] %vm348_vm7, %v345_v29 }
 0x190 PF: > { %s14_s19 = sadd.s32 1, %s554_s19   ;;  %s660_s15 = smov %s546_s17 }
 0x191   : > { %p11_p9 = scmp.ge.s32.totalorder %s14_s19, 10   ;;  %s661_s16 = smov %s550_s18 }
 0x192   : > { %s662_s17 = smov %s665_s20  ;;  %s663_s18 = smov %s669_s21 }
 0x193   :  { %13 = sbr.rel (!%p11_p9) target bundleno = 3 (0x3), region = 69 }

// kernel: generator_v2_forward.13
= control target key start
LH: loop header
LB: loop body
LE: loop exit
PB: predicated region body
PF: predicated region fallthrough
CT: control target
= control target key end

     0   :  { %s673_s21 = smov 0   ;;  %s675_s22 = smov 0   ;;  %s761_s0 = inlined_call_operand.vmem [shape: f32[2,72,8], index: 0, kind: input, shape index: {}, may-alias: {0,1}]   ;;  %s762_s1 = inlined_call_operand.vmem [shape: f32[2,72,8], index: 1, kind: input, shape index: {}, may-alias: {0,1}]   ;;  %s763_s2 = inlined_call_operand.vmem [shape: bf16[24,8], index: 2, kind: input, shape index: {}]   ;;  %s764_s3 = inlined_call_operand.vmem [shape: f32[1,8], index: 3, kind: input, shape index: {}]   ;;  %s765_s4 = inlined_call_operand.vmem [shape: bf16[8,8], index: 4, kind: input, shape index: {}]   ;;  %s766_s5 = inlined_call_operand.vmem [shape: f32[1,8], index: 5, kind: input, shape index: {}]   ;;  %s767_s6 = inlined_call_operand.vmem [shape: f32[2,64,8], index: 6, kind: output, shape index: {}]  }
   0x1   :  { %s677_s23 = smov 0   ;;  %s679_s24 = smov 0  }
   0x2   :  { %s681_s25 = smov 0  }
   0x3 LB: > { %s25_s26 = sadd.s32 1, %s626_s23  ;;  %s28_s27 = sadd.s32 1, %s630_s24  ;;  %s634_s25 = sphi %s681_s25, %s16_s25   ;;  %s630_s24 = sphi %s679_s24, %s771_s24   ;;  %s626_s23 = sphi %s677_s23, %s770_s23   ;;  %s622_s22 = sphi %s675_s22, %s769_s22   ;;  %s618_s21 = sphi %s673_s21, %s768_s21  }
   0x4   : > { %p26_p0 = scmp.ge.s32.totalorder %s25_s26, 8  ;;  %p537_p1 = scmp.ge.s32.totalorder %s634_s25, 1 }
   0x5   : > { %p250_p2 = scmp.lt.s32.totalorder %s634_s25, 17 }
   0x6   : > { %s773_s26 = smov (%p26_p0, %s25_s26), 0  ;;  %s775_s27 = smov (!%p26_p0, %s28_s27), %s630_s24 }
   0x7   : > { %p251_p3 = pnand %p537_p1, %p250_p2  ;;  %p30_p4 = scmp.ge.s32.totalorder %s775_s27, 2 }
   0x8   : > { %p295_p5 = scmp.lt.s32.totalorder (!%p251_p3), %s622_s22, 1  ;;  %p297_p6 = scmp.lt.s32.totalorder (!%p251_p3), %s618_s21, 8 }
   0x9   : > { %s777_s27 = smov (%p30_p4, %s775_s27), 0  ;;  %254 = sbr.rel (%p251_p3) target bundleno = 429 (0x1ad), region = 44 }
   0xa   : > { %s303_s28 = sadd.s32 (!%p251_p3), 1, %s618_s21  ;;  %s636_s17 = smov (!%p251_p3), 8  }
   0xb   : > { %p306_p7 = scmp.lt.s32.totalorder (!%p251_p3), %s303_s28, 8  ;;  %s637_s18 = smov (!%p251_p3), 16  }
   0xc   : > { %p315_p8 = scmp.lt.s32.totalorder (!%p251_p3), %s618_s21, 7 }
   0xe   : > { %s779_s22 = smov (!%p295_p5, %s622_s22), 1  ;;  %s781_s28 = smov (!%p306_p7, %s303_s28), 8  ;;  %v358_v16 = vld [vmem:[%s763_s2 + $0x8] sm:$0xf]  ;;  %vm375_vm2 = vcmask 1043456   ;;  %v550_v20 = vld [vmem:[%s763_s2] sm:$0xff] }
   0xf   : > { %s298_s29 = scalar_select %p297_p6, %s618_s21, 8  ;;  %v368_v17 = vunpack.c.l.b16 %v358_v16  ;;  %vm349_vm3 = vcmask 64512   ;;  %vm353_vm4 = vcmask 130048   ;;  %vm372_vm5 = vcmask 195584   ;;  %v396_v25 = vld [vmem:[%s765_s4] sm:$0xf] }
  0x10   : > { %s551_s30 = smul.u32 9, %s779_s22  ;;  %v405_v26 = vsel %vm375_vm2, %v396_v25, 0  ;;  %v594_v27 = vld [vmem:[%s764_s3] ss:$0 sm:$0xff]  ;;  %s783_s21 = smov (!%p315_p8, %s618_s21), 7  ;;  %vm425_vm7 = vcmask 64513  }
  0x11   : > { %v370_v18 = vpack.c.b16 %v368_v17, %v368_v17  ;;  %414 = vmatpush.bf16.msra.mxu1 %v405_v26  ;;  %s540_s10 = sshll.u32 %s779_s22, 3  ;;  %v595_v34 = vld [vmem:[%s766_s5] ss:$0 sm:$0xff]  ;;  %vm427_vm8 = vcmask 57344  }
  0x12   : > { %s300_s7 = sadd.s32 %s551_s30, %s298_s29  ;;  %s309_s12 = sadd.s32 %s551_s30, %s781_s28 }
  0x13   : > { %s538_s8 = sshll.u32 %s300_s7, 3  ;;  %s539_s13 = sshll.u32 %s309_s12, 3  ;;  %v377_v19 = vsel %vm375_vm2, %v370_v18, 0 }
  0x14   : > { %s302_s11 = scalar_lea.vmem %s761_s0, %s538_s8  ;;  %s311_s16 = scalar_lea.vmem %s762_s1, %s539_s13  ;;  %385 = vmatpush.bf16.msra.mxu0 %v377_v19 }
  0x15   : > { %v714_v0 = vld [vmem:[%s302_s11] sm:$0xff]  ;;  %s318_s13 = sadd.s32 %s540_s10, %s783_s21 }
  0x16   : > { %vm324_vm0 = vcmp.gt.f32.partialorder %v714_v0, 0.0  ;;  %v326_v1 = vmul.f32 0.2, %v714_v0  ;;  %v323_v3 = vld [vmem:[%s311_s16] sm:$0xff]  ;;  %s541_s14 = sshll.u32 %s318_s13, 3 }
  0x17   : > { %vm325_vm1 = vcmp.gt.f32.partialorder %v323_v3, 0.0  ;;  %v327_v5 = vmul.f32 0.2, %v323_v3 }
  0x18   : > { %v328_v2 = vsel %vm324_vm0, %v714_v0, %v326_v1  ;;  %386 = vmatpush.bf16.msra.mxu0 %v550_v20 }
  0x19   : > { %v330_v4 = vpack.c.bf16 %v328_v2, %v328_v2  ;;  %v329_v6 = vsel %vm325_vm1, %v323_v3, %v327_v5 }
  0x1a   : > { %v331_v7 = vpack.c.bf16 %v329_v6, %v329_v6 }
  0x1b   : > { %v334_v8 = vunpack.c.l.b16 %v330_v4 }
  0x1c   : > { %v335_v9 = vunpack.c.l.b16 %v331_v7 }
  0x1e   : > { %v336_v10 = vpack.c.b16 %v335_v9, %v334_v8 }
  0x20   : > { %v338_v11 = vshrl.u32 %v336_v10, 16  ;;  %v340_v12 = vshll.u32 %v336_v10, 16  ;;  %v346_v15 = vrot.slane %v336_v10, 1 }
  0x22   : > { %v342_v13 = vrot.slane %v340_v12, 1 }
  0x24   : > { %v343_v14 = vor.u32 %v342_v13, %v338_v11 }
  0x26   : > { %344 = vrot.lane.b32.xlu0 %v343_v14, %s636_s17  ;;  %s320_s17 = scalar_lea.vmem %s767_s6, %s541_s14 }
  0x2e   : > { %347 = vrot.lane.b32.xlu0 %v346_v15, %s637_s18 }
  0x98   : > { %v345_v21 = vpop.permute.xlu0 %344 }
  0x99   : > { %v352_v22 = vsel %vm349_vm3, %v330_v4, %v345_v21 }
  0xa0   : > { %v348_v23 = vpop.permute.xlu0 %347 }
  0xa1   : > { %v355_v24 = vsel %vm353_vm4, %v352_v22, %v348_v23 }
  0xa2   : > { %546 = vmatmul.msk.bf16.vlgmr.msra.gmra.mxu0 %vm372_vm5, %v355_v24 }
 0x11f   : > { %v388_v28 = vpop.f32.mrf.mxu0 }
 0x120   : > { %v389_v29 = vadd.f32 %v594_v27, %v388_v28 }
 0x122   : > { %vm392_vm6 = vcmp.gt.f32.partialorder %v389_v29, 0.0  ;;  %v393_v30 = vmul.f32 0.2, %v389_v29 }
 0x124   : > { %v394_v31 = vsel %vm392_vm6, %v389_v29, %v393_v30 }
 0x125   : > { %v395_v32 = vpack.c.bf16 %v394_v31, %v394_v31 }
 0x127   : > { %v390_v33 = vpop.f32.mrf.mxu0  ;;  %547 = vmatmul.msk.bf16.vlgmr.msra.gmra.mxu1 %vm349_vm3, %v395_v32 }
 0x1a4   : > { %v416_v35 = vpop.f32.mrf.mxu1 }
 0x1a5   : > { %v417_v36 = vadd.f32 %v595_v34, %v416_v35 }
 0x1a7   : > { %v421_v37 = vrot.slane %v417_v36, 7 }
 0x1a9   : > { %v423_v38 = vadd.f32 %v421_v37, %v714_v0  ;;  %v424_v39 = vadd.f32 %v421_v37, %v323_v3 }
 0x1ab   : > { %426 = vst.msk [vmem:[%s320_s17 - $0x1] sm:$0xfe] %vm425_vm7, %v423_v38 }
 0x1ac   : > { %428 = vst.msk [vmem:[%s320_s17 + $0x7] sm:$0x1] %vm427_vm8, %v424_v39  ;;  %v418_v40 = vpop.f32.mrf.mxu1 }
 0x1ad PF: > { %s16_s25 = sadd.s32 1, %s634_s25   ;;  %s768_s21 = smov %s626_s23 }
 0x1ae   : > { %p13_p9 = scmp.ge.s32.totalorder %s16_s25, 18   ;;  %s769_s22 = smov %s630_s24 }
 0x1af   : > { %s770_s23 = smov %s773_s26  ;;  %s771_s24 = smov %s777_s27 }
 0x1b0   :  { %15 = sbr.rel (!%p13_p9) target bundleno = 3 (0x3), region = 77 }

// kernel: generator_v2_forward.14
= control target key start
LH: loop header
LB: loop body
LE: loop exit
PB: predicated region body
PF: predicated region fallthrough
CT: control target
= control target key end

     0   :  { %s674_s21 = smov 0   ;;  %s676_s22 = smov 0   ;;  %s762_s0 = inlined_call_operand.vmem [shape: f32[2,72,8], index: 0, kind: input, shape index: {}, may-alias: {0,1}]   ;;  %s763_s1 = inlined_call_operand.vmem [shape: f32[2,72,8], index: 1, kind: input, shape index: {}, may-alias: {0,1}]   ;;  %s764_s2 = inlined_call_operand.vmem [shape: bf16[24,8], index: 2, kind: input, shape index: {}]   ;;  %s765_s3 = inlined_call_operand.vmem [shape: f32[1,8], index: 3, kind: input, shape index: {}]   ;;  %s766_s4 = inlined_call_operand.vmem [shape: bf16[8,8], index: 4, kind: input, shape index: {}]   ;;  %s767_s5 = inlined_call_operand.vmem [shape: f32[1,8], index: 5, kind: input, shape index: {}]   ;;  %s768_s6 = inlined_call_operand.vmem [shape: f32[2,64,8], index: 6, kind: output, shape index: {}]  }
   0x1   :  { %s678_s23 = smov 0   ;;  %s680_s24 = smov 0  }
   0x2   :  { %s682_s25 = smov 0  }
   0x3 LB: > { %s25_s26 = sadd.s32 1, %s627_s23  ;;  %s28_s27 = sadd.s32 1, %s631_s24  ;;  %s635_s25 = sphi %s682_s25, %s16_s25   ;;  %s631_s24 = sphi %s680_s24, %s772_s24   ;;  %s627_s23 = sphi %s678_s23, %s771_s23   ;;  %s623_s22 = sphi %s676_s22, %s770_s22   ;;  %s619_s21 = sphi %s674_s21, %s769_s21  }
   0x4   : > { %p26_p0 = scmp.ge.s32.totalorder %s25_s26, 8  ;;  %p538_p1 = scmp.ge.s32.totalorder %s635_s25, 1 }
   0x5   : > { %p250_p2 = scmp.lt.s32.totalorder %s635_s25, 17 }
   0x6   : > { %s774_s26 = smov (%p26_p0, %s25_s26), 0  ;;  %s776_s27 = smov (!%p26_p0, %s28_s27), %s631_s24 }
   0x7   : > { %p251_p3 = pnand %p538_p1, %p250_p2  ;;  %p30_p4 = scmp.ge.s32.totalorder %s776_s27, 2 }
   0x8   : > { %p295_p5 = scmp.lt.s32.totalorder (!%p251_p3), %s623_s22, 1  ;;  %p297_p6 = scmp.lt.s32.totalorder (!%p251_p3), %s619_s21, 8 }
   0x9   : > { %s778_s27 = smov (%p30_p4, %s776_s27), 0  ;;  %254 = sbr.rel (%p251_p3) target bundleno = 429 (0x1ad), region = 44 }
   0xa   : > { %s303_s28 = sadd.s32 (!%p251_p3), 1, %s619_s21  ;;  %s637_s17 = smov (!%p251_p3), 8  }
   0xb   : > { %p306_p7 = scmp.lt.s32.totalorder (!%p251_p3), %s303_s28, 8  ;;  %s638_s18 = smov (!%p251_p3), 16  }
   0xc   : > { %p315_p8 = scmp.lt.s32.totalorder (!%p251_p3), %s619_s21, 7 }
   0xe   : > { %s780_s22 = smov (!%p295_p5, %s623_s22), 1  ;;  %s782_s28 = smov (!%p306_p7, %s303_s28), 8  ;;  %v359_v17 = vld [vmem:[%s764_s2 + $0x8] sm:$0xf]  ;;  %vm376_vm2 = vcmask 1043456   ;;  %v551_v21 = vld [vmem:[%s764_s2] sm:$0xff] }
   0xf   : > { %s298_s29 = scalar_select %p297_p6, %s619_s21, 8  ;;  %v369_v18 = vunpack.c.l.b16 %v359_v17  ;;  %vm350_vm3 = vcmask 64512   ;;  %vm354_vm4 = vcmask 130048   ;;  %vm373_vm5 = vcmask 195584   ;;  %v397_v26 = vld [vmem:[%s766_s4] sm:$0xf] }
  0x10   : > { %s552_s30 = smul.u32 9, %s780_s22  ;;  %v406_v27 = vsel %vm376_vm2, %v397_v26, 0  ;;  %v595_v28 = vld [vmem:[%s765_s3] ss:$0 sm:$0xff]  ;;  %s784_s21 = smov (!%p315_p8, %s619_s21), 7  ;;  %vm426_vm7 = vcmask 64515  }
  0x11   : > { %v371_v19 = vpack.c.b16 %v369_v18, %v369_v18  ;;  %415 = vmatpush.bf16.msra.mxu1 %v406_v27  ;;  %s541_s10 = sshll.u32 %s780_s22, 3  ;;  %v596_v35 = vld [vmem:[%s767_s5] ss:$0 sm:$0xff]  ;;  %vm428_vm8 = vcmask 59392  }
  0x12   : > { %s300_s7 = sadd.s32 %s552_s30, %s298_s29  ;;  %s309_s12 = sadd.s32 %s552_s30, %s782_s28 }
  0x13   : > { %s539_s8 = sshll.u32 %s300_s7, 3  ;;  %s540_s13 = sshll.u32 %s309_s12, 3  ;;  %v378_v20 = vsel %vm376_vm2, %v371_v19, 0 }
  0x14   : > { %s302_s11 = scalar_lea.vmem %s762_s0, %s539_s8  ;;  %s311_s16 = scalar_lea.vmem %s763_s1, %s540_s13  ;;  %386 = vmatpush.bf16.msra.mxu0 %v378_v20 }
  0x15   : > { %v715_v0 = vld [vmem:[%s302_s11] sm:$0xff]  ;;  %s318_s13 = sadd.s32 %s541_s10, %s784_s21 }
  0x16   : > { %vm324_vm0 = vcmp.gt.f32.partialorder %v715_v0, 0.0  ;;  %v326_v1 = vmul.f32 0.2, %v715_v0  ;;  %v323_v3 = vld [vmem:[%s311_s16] sm:$0xff]  ;;  %s542_s14 = sshll.u32 %s318_s13, 3 }
  0x17   : > { %vm325_vm1 = vcmp.gt.f32.partialorder %v323_v3, 0.0  ;;  %v327_v5 = vmul.f32 0.2, %v323_v3 }
  0x18   : > { %v328_v2 = vsel %vm324_vm0, %v715_v0, %v326_v1  ;;  %387 = vmatpush.bf16.msra.mxu0 %v551_v21 }
  0x19   : > { %v330_v4 = vpack.c.bf16 %v328_v2, %v328_v2  ;;  %v329_v6 = vsel %vm325_vm1, %v323_v3, %v327_v5 }
  0x1a   : > { %v331_v7 = vpack.c.bf16 %v329_v6, %v329_v6 }
  0x1b   : > { %v334_v8 = vunpack.c.l.b16 %v330_v4 }
  0x1c   : > { %v335_v9 = vunpack.c.l.b16 %v331_v7 }
  0x1e   : > { %v336_v10 = vpack.c.b16 %v335_v9, %v334_v8 }
  0x20   : > { %v338_v11 = vshrl.u32 %v336_v10, 16  ;;  %v341_v12 = vshll.u32 %v336_v10, 16  ;;  %v347_v16 = vrot.slane %v336_v10, 3 }
  0x22   : > { %v340_v13 = vrot.slane %v338_v11, 1  ;;  %v343_v14 = vrot.slane %v341_v12, 2 }
  0x24   : > { %v344_v15 = vor.u32 %v343_v14, %v340_v13 }
  0x26   : > { %345 = vrot.lane.b32.xlu0 %v344_v15, %s637_s17  ;;  %s320_s17 = scalar_lea.vmem %s768_s6, %s542_s14 }
  0x2e   : > { %348 = vrot.lane.b32.xlu0 %v347_v16, %s638_s18 }
  0x98   : > { %v346_v22 = vpop.permute.xlu0 %345 }
  0x99   : > { %v353_v23 = vsel %vm350_vm3, %v330_v4, %v346_v22 }
  0xa0   : > { %v349_v24 = vpop.permute.xlu0 %348 }
  0xa1   : > { %v356_v25 = vsel %vm354_vm4, %v353_v23, %v349_v24 }
  0xa2   : > { %547 = vmatmul.msk.bf16.vlgmr.msra.gmra.mxu0 %vm373_vm5, %v356_v25 }
 0x11f   : > { %v389_v29 = vpop.f32.mrf.mxu0 }
 0x120   : > { %v390_v30 = vadd.f32 %v595_v28, %v389_v29 }
 0x122   : > { %vm393_vm6 = vcmp.gt.f32.partialorder %v390_v30, 0.0  ;;  %v394_v31 = vmul.f32 0.2, %v390_v30 }
 0x124   : > { %v395_v32 = vsel %vm393_vm6, %v390_v30, %v394_v31 }
 0x125   : > { %v396_v33 = vpack.c.bf16 %v395_v32, %v395_v32 }
 0x127   : > { %v391_v34 = vpop.f32.mrf.mxu0  ;;  %548 = vmatmul.msk.bf16.vlgmr.msra.gmra.mxu1 %vm350_vm3, %v396_v33 }
 0x1a4   : > { %v417_v36 = vpop.f32.mrf.mxu1 }
 0x1a5   : > { %v418_v37 = vadd.f32 %v596_v35, %v417_v36 }
 0x1a7   : > { %v422_v38 = vrot.slane %v418_v37, 5 }
 0x1a9   : > { %v424_v39 = vadd.f32 %v422_v38, %v715_v0  ;;  %v425_v40 = vadd.f32 %v422_v38, %v323_v3 }
 0x1ab   : > { %427 = vst.msk [vmem:[%s320_s17 - $0x3] sm:$0xf8] %vm426_vm7, %v424_v39 }
 0x1ac   : > { %429 = vst.msk [vmem:[%s320_s17 + $0x5] sm:$0x7] %vm428_vm8, %v425_v40  ;;  %v419_v41 = vpop.f32.mrf.mxu1 }
 0x1ad PF: > { %s16_s25 = sadd.s32 1, %s635_s25   ;;  %s769_s21 = smov %s627_s23 }
 0x1ae   : > { %p13_p9 = scmp.ge.s32.totalorder %s16_s25, 18   ;;  %s770_s22 = smov %s631_s24 }
 0x1af   : > { %s771_s23 = smov %s774_s26  ;;  %s772_s24 = smov %s778_s27 }
 0x1b0   :  { %15 = sbr.rel (!%p13_p9) target bundleno = 3 (0x3), region = 77 }

// kernel: generator_v2_forward.15
= control target key start
LH: loop header
LB: loop body
LE: loop exit
PB: predicated region body
PF: predicated region fallthrough
CT: control target
= control target key end

     0   :  { %s642_s17 = smov 0   ;;  %s644_s18 = smov 0   ;;  %s719_s0 = inlined_call_operand.vmem [shape: f32[2,72,8], index: 0, kind: input, shape index: {}, may-alias: {0,1}]   ;;  %s720_s1 = inlined_call_operand.vmem [shape: f32[2,72,8], index: 1, kind: input, shape index: {}, may-alias: {0,1}]   ;;  %s721_s2 = inlined_call_operand.vmem [shape: bf16[56,1], index: 2, kind: input, shape index: {}]   ;;  %s722_s3 = inlined_call_operand.<no memory space> [shape: f32[1,1], index: 3, kind: input, shape index: {}]   ;;  %s723_s4 = inlined_call_operand.vmem [shape: f32[2,64,1], index: 4, kind: output, shape index: {}]  }
   0x1   :  { %v9_v0 = vstv %s722_s3  ;;  %s646_s19 = smov 0   ;;  %s648_s20 = smov 0  }
   0x2   :  { %10 = vst [vmem:[#allocation2] sm:$0x1] %v9_v0  ;;  %s650_s21 = smov 0  }
   0x3 LB: > { %s25_s3 = sadd.s32 1, %s598_s19  ;;  %s28_s22 = sadd.s32 1, %s602_s20  ;;  %s606_s21 = sphi %s650_s21, %s16_s21   ;;  %s602_s20 = sphi %s648_s20, %s727_s20   ;;  %s598_s19 = sphi %s646_s19, %s726_s19   ;;  %s594_s18 = sphi %s644_s18, %s725_s18   ;;  %s590_s17 = sphi %s642_s17, %s724_s17  }
   0x4   : > { %p26_p0 = scmp.ge.s32.totalorder %s25_s3, 8  ;;  %p495_p1 = scmp.ge.s32.totalorder %s606_s21, 1 }
   0x5   : > { %p202_p2 = scmp.lt.s32.totalorder %s606_s21, 17 }
   0x6   : > { %s729_s3 = smov (%p26_p0, %s25_s3), 0  ;;  %s731_s22 = smov (!%p26_p0, %s28_s22), %s602_s20 }
   0x7   : > { %p203_p3 = pnand %p495_p1, %p202_p2  ;;  %p30_p4 = scmp.ge.s32.totalorder %s731_s22, 2 }
   0x8   : > { %p243_p5 = scmp.lt.s32.totalorder (!%p203_p3), %s594_s18, 1  ;;  %p245_p6 = scmp.lt.s32.totalorder (!%p203_p3), %s590_s17, 8 }
   0x9   : > { %s733_s22 = smov (%p30_p4, %s731_s22), 0  ;;  %206 = sbr.rel (%p203_p3) target bundleno = 302 (0x12e), region = 36 }
   0xa   : > { %s251_s23 = sadd.s32 (!%p203_p3), 1, %s590_s17  ;;  %s608_s12 = smov (!%p203_p3), 8  }
   0xb   : > { %p254_p7 = scmp.lt.s32.totalorder (!%p203_p3), %s251_s23, 8  ;;  %s609_s13 = smov (!%p203_p3), 24  }
   0xc   : > { %s610_s14 = smov (!%p203_p3), 40   ;;  %s611_s15 = smov (!%p203_p3), 16  }
   0xd   : > { %s612_s16 = smov (!%p203_p3), 32   ;;  %p263_p8 = scmp.lt.s32.totalorder (!%p203_p3), %s590_s17, 7 }
   0xe   : > { %s735_s18 = smov (!%p243_p5, %s594_s18), 1  ;;  %v338_v1 = vld [vmem:[%s721_s2 + $0x18] sm:$0xf]  ;;  %s737_s23 = smov (!%p254_p7, %s251_s23), 8  ;;  %vm367_vm0 = vcmask 1043456   ;;  %v517_v29 = vld [vmem:[%s721_s2 + $0x10] sm:$0xff] }
   0xf   : > { %s246_s24 = scalar_select %p245_p6, %s590_s17, 8  ;;  %v356_v2 = vunpack.c.l.b16 %v338_v1  ;;  %v516_v30 = vld [vmem:[%s721_s2 + $0x8] sm:$0xff]  ;;  %v515_v31 = vld [vmem:[%s721_s2] sm:$0xff]  ;;  %vm313_vm3 = vcmask 64512   ;;  %vm317_vm4 = vcmask 130048   ;;  %vm320_vm5 = vcmask 195584  }
  0x10   : > { %s518_s25 = smul.u32 9, %s735_s18  ;;  %vm323_vm6 = vcmask 261120   ;;  %vm326_vm7 = vcmask 326656   ;;  %vm329_vm8 = vcmask 392192   ;;  %vm364_vm9 = vcmask 457728   ;;  %s739_s17 = smov (!%p263_p8, %s590_s17), 7 }
  0x11   : > { %v360_v5 = vpack.c.b16 %v356_v2, %v356_v2  ;;  %v565_v44 = vld [vmem:[#allocation2] ss:$0 sm:$0xff]  ;;  %s498_s30 = sshll.u32 %s735_s18, 3  ;;  %vm385_vm10 = vcmask 7168  }
  0x12   : > { %s248_s26 = sadd.s32 %s518_s25, %s246_s24  ;;  %s257_s7 = sadd.s32 %s518_s25, %s737_s23 }
  0x13   : > { %s496_s27 = sshll.u32 %s248_s26, 3  ;;  %s497_s8 = sshll.u32 %s257_s7, 3  ;;  %v369_v7 = vsel %vm367_vm0, %v360_v5, 0 }
  0x14   : > { %s250_s6 = scalar_lea.vmem %s719_s0, %s496_s27  ;;  %s259_s11 = scalar_lea.vmem %s720_s1, %s497_s8  ;;  %375 = vmatpush.bf16.msra.mxu0 %v369_v7 }
  0x15   : > { %v270_v3 = vld [vmem:[%s250_s6] sm:$0xff]  ;;  %s613_s23 = smov 48   ;;  %s266_s5 = sadd.s32 %s498_s30, %s739_s17 }
  0x16   : > { %vm272_vm1 = vcmp.gt.f32.partialorder %v270_v3, 0.0  ;;  %v274_v4 = vmul.f32 0.2, %v270_v3  ;;  %v271_v8 = vld [vmem:[%s259_s11] sm:$0xff]  ;;  %s499_s6 = sshll.u32 %s266_s5, 3 }
  0x17   : > { %vm273_vm2 = vcmp.gt.f32.partialorder %v271_v8, 0.0  ;;  %v275_v10 = vmul.f32 0.2, %v271_v8  ;;  %s268_s9 = scalar_lea.vmem %s723_s4, %s499_s6 }
  0x18   : > { %v276_v6 = vsel %vm272_vm1, %v270_v3, %v274_v4  ;;  %376 = vmatpush.bf16.msra.mxu0 %v517_v29 }
  0x19   : > { %v278_v9 = vpack.c.bf16 %v276_v6, %v276_v6  ;;  %v277_v11 = vsel %vm273_vm2, %v271_v8, %v275_v10 }
  0x1a   : > { %v279_v12 = vpack.c.bf16 %v277_v11, %v277_v11 }
  0x1b   : > { %v282_v13 = vunpack.c.l.b16 %v278_v9 }
  0x1c   : > { %v283_v14 = vunpack.c.l.b16 %v279_v12  ;;  %377 = vmatpush.bf16.msra.mxu0 %v516_v30 }
  0x1e   : > { %v284_v15 = vpack.c.b16 %v283_v14, %v282_v13 }
  0x20   : > { %v286_v16 = vshrl.u32 %v284_v15, 16  ;;  %v288_v17 = vshll.u32 %v284_v15, 16  ;;  %v294_v26 = vrot.slane %v284_v15, 1  ;;  %v302_v27 = vrot.slane %v284_v15, 2  ;;  %378 = vmatpush.bf16.msra.mxu0 %v515_v31 }
  0x21   : > { %v310_v28 = vrot.slane %v284_v15, 3 }
  0x22   : > { %v290_v18 = vrot.slane %v288_v17, 1  ;;  %v297_v19 = vrot.slane %v286_v16, 1  ;;  %v298_v20 = vrot.slane %v288_v17, 2  ;;  %v305_v21 = vrot.slane %v286_v16, 2 }
  0x23   : > { %v306_v22 = vrot.slane %v288_v17, 3 }
  0x24   : > { %v291_v23 = vor.u32 %v290_v18, %v286_v16  ;;  %v299_v24 = vor.u32 %v298_v20, %v297_v19 }
  0x25   : > { %v307_v25 = vor.u32 %v306_v22, %v305_v21 }
  0x26   : > { %292 = vrot.lane.b32.xlu0 %v291_v23, %s608_s12  ;;  %300 = vrot.lane.b32.xlu1 %v299_v24, %s609_s13 }
  0x27   : > { %308 = vrot.lane.b32.xlu2 %v307_v25, %s610_s14 }
  0x2e   : > { %295 = vrot.lane.b32.xlu0 %v294_v26, %s611_s15  ;;  %303 = vrot.lane.b32.xlu1 %v302_v27, %s612_s16 }
  0x2f   : > { %311 = vrot.lane.b32.xlu2 %v310_v28, %s613_s23 }
  0x81   : > { %v309_v32 = vpop.permute.xlu2 %308 }
  0x89   : > { %v312_v40 = vpop.permute.xlu2 %311 }
  0x98   : > { %v293_v33 = vpop.permute.xlu0 %292  ;;  %v301_v34 = vpop.permute.xlu1 %300 }
  0x99   : > { %v316_v35 = vsel %vm313_vm3, %v278_v9, %v293_v33 }
  0xa0   : > { %v296_v36 = vpop.permute.xlu0 %295  ;;  %v304_v37 = vpop.permute.xlu1 %303 }
  0xa1   : > { %v319_v38 = vsel %vm317_vm4, %v316_v35, %v296_v36 }
  0xa2   : > { %v322_v39 = vsel %vm320_vm5, %v319_v38, %v301_v34 }
  0xa3   : > { %v325_v41 = vsel %vm323_vm6, %v322_v39, %v304_v37 }
  0xa4   : > { %v328_v42 = vsel %vm326_vm7, %v325_v41, %v309_v32 }
  0xa5   : > { %v331_v43 = vsel %vm329_vm8, %v328_v42, %v312_v40 }
  0xa6   : > { %512 = vmatmul.msk.bf16.vlgmr.msra.gmra.mxu0 %vm364_vm9, %v331_v43 }
 0x123   : > { %v380_v45 = vpop.f32.mrf.mxu0 }
 0x124   : > { %v381_v46 = vadd.f32 %v565_v44, %v380_v45 }
 0x126   : > { %566 = vtanh.f32 %v381_v46 }
 0x12b   : > { %v382_v47 = vpop.f32.mrf.mxu0 }
 0x12c   : > { %v567_v48 = vpop.eup %566 }
 0x12d   : > { %386 = vst.msk [vmem:[%s268_s9] sm:$0xff] %vm385_vm10, %v567_v48 }
 0x12e PF: > { %s16_s21 = sadd.s32 1, %s606_s21   ;;  %s724_s17 = smov %s598_s19 }
 0x12f   : > { %p13_p9 = scmp.ge.s32.totalorder %s16_s21, 18   ;;  %s725_s18 = smov %s602_s20 }
 0x130   : > { %s726_s19 = smov %s729_s3  ;;  %s727_s20 = smov %s733_s22 }
 0x131   :  { %15 = sbr.rel (!%p13_p9) target bundleno = 3 (0x3), region = 69 }

</bundles_post_ra>
